<compile_context>
chip_gen: v6e
topology: v6e:2x2x1
jax: 0.10.0
libtpu: 0.0.40
codegen_flags: <defaults>
</compile_context>

<pallas_src>
import functools
import math

import jax
import jax.numpy as jnp
from jax.experimental import pallas as pl
from jax.experimental.pallas import tpu as pltpu


# ---------------------------------------------------------------- kernel math

def _layernorm(x, gamma, beta, eps=1e-5):
    mean = jnp.mean(x, axis=-1, keepdims=True)
    xc = x - mean
    var = jnp.mean(xc * xc, axis=-1, keepdims=True)
    return xc * jax.lax.rsqrt(var + eps) * gamma + beta


def avhan_kernel(q_ref, v_ref,
                 wq_ref, bq_ref, wv_ref, bv_ref,
                 wo_ref, bo_ref,
                 w1_ref, b1_ref, w2_ref, b2_ref,
                 g1_ref, be1_ref, g2_ref, be2_ref,
                 out_ref, *, nhead, block_b, seq, d_model):
    cdt = wq_ref.dtype                      # matmul compute dtype (f32 or bf16)
    hd = d_model // nhead
    rows = block_b * seq

    # fold batch into the row (sublane) axis
    q = q_ref[...].reshape(rows, d_model)   # (BB*T, D) fp32
    v = v_ref[...].reshape(rows, d_model)

    # fused projections: six small matmuls -> two wide MXU matmuls
    pq = jnp.dot(q.astype(cdt), wq_ref[...],
                 preferred_element_type=jnp.float32) + bq_ref[...]   # (rows, 4D)
    pv = jnp.dot(v.astype(cdt), wv_ref[...],
                 preferred_element_type=jnp.float32) + bv_ref[...]   # (rows, 2D)

    q_cm = pq[:, 0:d_model]                 # cross-modal queries (pre-scaled)
    q_sa = pq[:, d_model:2 * d_model]       # self-attn queries (pre-scaled)
    k_sa = pq[:, 2 * d_model:3 * d_model]
    v_sa = pq[:, 3 * d_model:4 * d_model]
    k_cm = pv[:, 0:d_model]
    v_cm = pv[:, d_model:2 * d_model]

    # TODO(synk): at production d_model (hd multiple of 128) replace the static
    # head loop with a single head-batched lax.dot_general; at hd=8 the lane
    # slices are sub-tile either way and this form lowers robustly.
    def attend(Qb, Kb, Vb, head_off):
        """One batch element: sum_h softmax(Qh Kh^T) Vh @ Wo[head_off+h]."""
        acc = jnp.zeros((seq, d_model), jnp.float32)
        for h in range(nhead):
            sl = slice(h * hd, (h + 1) * hd)
            s = jnp.dot(Qb[:, sl].astype(cdt), Kb[:, sl].astype(cdt).T,
                        preferred_element_type=jnp.float32)          # (T, S)
            s = s - jnp.max(s, axis=-1, keepdims=True)
            p = jnp.exp(s)
            p = p * pl.reciprocal(jnp.sum(p, axis=-1, keepdims=True), approx=True)
            ctx = jnp.dot(p.astype(cdt), Vb[:, sl].astype(cdt),
                          preferred_element_type=jnp.float32)        # (T, hd)
            # fold context straight through this head's output-projection slab
            acc = acc + jnp.dot(ctx.astype(cdt), wo_ref[head_off + h],
                                preferred_element_type=jnp.float32)  # (T, D)
        return acc

    attn_blocks = []
    for b in range(block_b):                # static loop; attention is per-batch
        rs = slice(b * seq, (b + 1) * seq)
        a = attend(q_cm[rs], k_cm[rs], v_cm[rs], 0)           # cm_attn(q, v, v)
        a = a + attend(q_sa[rs], k_sa[rs], v_sa[rs], nhead)   # self_attn(q, q, q)
        attn_blocks.append(a)
    attn = attn_blocks[0] if block_b == 1 else jnp.concatenate(attn_blocks, axis=0)

    # dropout11 / dropout12 / dropout / dropout2 are identity in inference mode
    x = q + attn + bo_ref[...]              # bo = cm_out_bias + sa_out_bias
    x = _layernorm(x, g1_ref[...], be1_ref[...])

    h1 = jnp.maximum(
        jnp.dot(x.astype(cdt), w1_ref[...],
                preferred_element_type=jnp.float32) + b1_ref[...], 0.0)
    f = jnp.dot(h1.astype(cdt), w2_ref[...],
                preferred_element_type=jnp.float32) + b2_ref[...]

    y = _layernorm(x + f, g2_ref[...], be2_ref[...])
    out_ref[...] = y.reshape(block_b, seq, d_model).astype(out_ref.dtype)


# ---------------------------------------------------------------- wrapper

def _pick_block_b(batch):
    """Keep >=2 grid steps when possible (v7x: 2 TensorCores), else fold all."""
    if batch <= 1:
        return max(batch, 1)
    bb = max(1, batch // 2)
    while batch % bb:
        bb -= 1
    return bb


def avhan_forward(src_q, src_v, params, *, nhead, block_b=None):
    """params is the flat list of prepared weight arrays in kernel-arg order."""
    B, T, D = src_q.shape
    if block_b is None:
        block_b = _pick_block_b(B)
    assert B % block_b == 0
    grid = (B // block_b,)

    kernel = functools.partial(avhan_kernel, nhead=nhead, block_b=block_b,
                               seq=T, d_model=D)

    def param_spec(arr):
        # full-array (untiled) block, resident across the batch grid
        nd = arr.ndim
        return pl.BlockSpec(arr.shape, lambda i, _nd=nd: (0,) * _nd)

    in_specs = [
        pl.BlockSpec((block_b, T, D), lambda i: (i, 0, 0)),   # src_q
        pl.BlockSpec((block_b, T, D), lambda i: (i, 0, 0)),   # src_v
    ] + [param_spec(p) for p in params]

    out_spec = pl.BlockSpec((block_b, T, D), lambda i: (i, 0, 0))

    return pl.pallas_call(
        kernel,
        out_shape=jax.ShapeDtypeStruct((B, T, D), jnp.float32),
        grid=grid,
        in_specs=in_specs,
        out_specs=out_spec,
        compiler_params=pltpu.CompilerParams(
            dimension_semantics=("parallel",),
            # explicit scoped-VMEM budget; tune upward per generation at
            # production d_model (v5e/v6e have 128 MiB physical, v7x 64 MiB).
            vmem_limit_bytes=32 * 1024 * 1024),
    )(src_q, src_v, *params)


# ---------------------------------------------------------------- params & ref

def make_raw_params(key, d_model, nhead, dim_feedforward):
    """Deterministic synthetic params mirroring the PyTorch module layout."""
    ks = jax.random.split(key, 10)
    s = 0.05

    def mha(k):
        k0, k1, k2, k3 = jax.random.split(k, 4)
        return dict(
            in_w=jax.random.normal(k0, (3 * d_model, d_model), jnp.float32) * s,
            in_b=jax.random.normal(k1, (3 * d_model,), jnp.float32) * s,
            out_w=jax.random.normal(k2, (d_model, d_model), jnp.float32) * s,
            out_b=jax.random.normal(k3, (d_model,), jnp.float32) * s)

    return dict(
        cm=mha(ks[0]), sa=mha(ks[1]),
        w1=jax.random.normal(ks[2], (dim_feedforward, d_model), jnp.float32) * s,
        b1=jax.random.normal(ks[3], (dim_feedforward,), jnp.float32) * s,
        w2=jax.random.normal(ks[4], (d_model, dim_feedforward), jnp.float32) * s,
        b2=jax.random.normal(ks[5], (d_model,), jnp.float32) * s,
        g1=1.0 + 0.1 * jax.random.normal(ks[6], (d_model,), jnp.float32),
        be1=0.1 * jax.random.normal(ks[7], (d_model,), jnp.float32),
        g2=1.0 + 0.1 * jax.random.normal(ks[8], (d_model,), jnp.float32),
        be2=0.1 * jax.random.normal(ks[9], (d_model,), jnp.float32))


def prepare_kernel_params(raw, d_model, nhead, compute_dtype=jnp.bfloat16):
    """Fuse / pre-transpose weights into the kernel's argument layout."""
    hd = d_model // nhead
    scale = 1.0 / math.sqrt(hd)

    def split_in(p):
        w, b = p["in_w"], p["in_b"]
        return (w[:d_model].T, w[d_model:2 * d_model].T, w[2 * d_model:].T,
                b[:d_model], b[d_model:2 * d_model], b[2 * d_model:])

    cm_wq, cm_wk, cm_wv, cm_bq, cm_bk, cm_bv = split_in(raw["cm"])
    sa_wq, sa_wk, sa_wv, sa_bq, sa_bk, sa_bv = split_in(raw["sa"])

    # attention scale folded into the query projections
    wq_fused = jnp.concatenate(
        [cm_wq * scale, sa_wq * scale, sa_wk, sa_wv], axis=1)        # (D, 4D)
    bq_fused = jnp.concatenate(
        [cm_bq * scale, sa_bq * scale, sa_bk, sa_bv]).reshape(1, -1)
    wv_fused = jnp.concatenate([cm_wk, cm_wv], axis=1)               # (D, 2D)
    bv_fused = jnp.concatenate([cm_bk, cm_bv]).reshape(1, -1)

    # per-head output-projection slabs: cm heads first, then sa heads
    wo_cm = raw["cm"]["out_w"].T.reshape(nhead, hd, d_model)
    wo_sa = raw["sa"]["out_w"].T.reshape(nhead, hd, d_model)
    wo_heads = jnp.concatenate([wo_cm, wo_sa], axis=0)               # (2H, hd, D)
    bo_sum = (raw["cm"]["out_b"] + raw["sa"]["out_b"]).reshape(1, -1)

    cdt = compute_dtype
    return [
        wq_fused.astype(cdt), bq_fused,
        wv_fused.astype(cdt), bv_fused,
        wo_heads.astype(cdt), bo_sum,
        raw["w1"].T.astype(cdt), raw["b1"].reshape(1, -1),
        raw["w2"].T.astype(cdt), raw["b2"].reshape(1, -1),
        raw["g1"].reshape(1, -1), raw["be1"].reshape(1, -1),
        raw["g2"].reshape(1, -1), raw["be2"].reshape(1, -1),
    ]


def avhan_reference(src_q, src_v, raw, nhead):
    """Pure-JAX fp32 reference of the PyTorch forward (inference mode)."""
    D = src_q.shape[-1]
    hd = D // nhead

    def ln(x, g, b, eps=1e-5):
        m = jnp.mean(x, -1, keepdims=True)
        v = jnp.mean((x - m) ** 2, -1, keepdims=True)
        return (x - m) / jnp.sqrt(v + eps) * g + b

    def mha(q, kv, p):
        W, bvec = p["in_w"], p["in_b"]
        wq, wk, wv = W[:D], W[D:2 * D], W[2 * D:]
        bq, bk, bv = bvec[:D], bvec[D:2 * D], bvec[2 * D:]
        B, T, _ = q.shape
        S = kv.shape[1]
        Q = (q @ wq.T + bq).reshape(B, T, nhead, hd)
        K = (kv @ wk.T + bk).reshape(B, S, nhead, hd)
        V = (kv @ wv.T + bv).reshape(B, S, nhead, hd)
        s = jnp.einsum("bqhd,bkhd->bhqk", Q, K) / math.sqrt(hd)
        pr = jax.nn.softmax(s, axis=-1)
        o = jnp.einsum("bhqk,bkhd->bqhd", pr, V).reshape(B, T, D)
        return o @ p["out_w"].T + p["out_b"]

    src1 = mha(src_q, src_v, raw["cm"])
    src2 = mha(src_q, src_q, raw["sa"])
    x = ln(src_q + src1 + src2, raw["g1"], raw["be1"])
    f = jnp.maximum(x @ raw["w1"].T + raw["b1"], 0.0) @ raw["w2"].T + raw["b2"]
    return ln(x + f, raw["g2"], raw["be2"])


# ---------------------------------------------------------------- main

if __name__ == "__main__":
    # TODO(synk): src_mask / src_key_padding_mask are None in this synthetic
    # setup; masked attention is not implemented in the kernel.
    B, T, D = 4, 8, 32
    NHEAD = 4
    DFF = 64

    key = jax.random.PRNGKey(0)
    k_q, k_v, k_p = jax.random.split(key, 3)
    src_q = jax.random.normal(k_q, (B, T, D), jnp.float32)
    src_v = jax.random.normal(k_v, (B, T, D), jnp.float32)
    raw = make_raw_params(k_p, D, NHEAD, DFF)

    ref = avhan_reference(src_q, src_v, raw, NHEAD)

    # fp32 matmul path (tight check)
    p32 = prepare_kernel_params(raw, D, NHEAD, compute_dtype=jnp.float32)
    out32 = jax.block_until_ready(avhan_forward(src_q, src_v, p32, nhead=NHEAD))
    assert out32.shape == (B, T, D)
    err32 = float(jnp.max(jnp.abs(out32 - ref)))
    assert err32 < 5e-3, f"fp32 max abs err {err32}"

    # bf16 matmul path (MXU-native; fp32 accumulation; looser tolerance)
    pbf = prepare_kernel_params(raw, D, NHEAD, compute_dtype=jnp.bfloat16)
    outbf = jax.block_until_ready(avhan_forward(src_q, src_v, pbf, nhead=NHEAD))
    errbf = float(jnp.max(jnp.abs(outbf - ref)))
    assert errbf < 4e-2, f"bf16 max abs err {errbf}"

    print("KERNEL_OK")
</pallas_src>

<mosaic_0001>
module attributes {stable_mosaic.version = 11 : i64} {
  func.func @avhan_kernel(%arg0: i32, %arg1: memref<2x8x32xf32, #tpu.memory_space<vmem>>, %arg2: memref<2x8x32xf32, #tpu.memory_space<vmem>>, %arg3: memref<32x128xf32, #tpu.memory_space<vmem>>, %arg4: memref<1x128xf32, #tpu.memory_space<vmem>>, %arg5: memref<32x64xf32, #tpu.memory_space<vmem>>, %arg6: memref<1x64xf32, #tpu.memory_space<vmem>>, %arg7: memref<8x8x32xf32, #tpu.memory_space<vmem>>, %arg8: memref<1x32xf32, #tpu.memory_space<vmem>>, %arg9: memref<32x64xf32, #tpu.memory_space<vmem>>, %arg10: memref<1x64xf32, #tpu.memory_space<vmem>>, %arg11: memref<64x32xf32, #tpu.memory_space<vmem>>, %arg12: memref<1x32xf32, #tpu.memory_space<vmem>>, %arg13: memref<1x32xf32, #tpu.memory_space<vmem>>, %arg14: memref<1x32xf32, #tpu.memory_space<vmem>>, %arg15: memref<1x32xf32, #tpu.memory_space<vmem>>, %arg16: memref<1x32xf32, #tpu.memory_space<vmem>>, %arg17: memref<2x8x32xf32, #tpu.memory_space<vmem>>) attributes {dimension_semantics = [#tpu.dimension_semantics<parallel>], iteration_bounds = array<i64: 2>, scalar_prefetch = 0 : i64, scratch_operands = 0 : i64, tpu.core_type = #tpu.core_type<tc>, window_params = [{transform_indices = @transform_0, window_bounds = array<i64: 2, 8, 32>}, {transform_indices = @transform_1, window_bounds = array<i64: 2, 8, 32>}, {pipeline_mode = #tpu.pipeline_mode<synchronous>, transform_indices = @transform_2, window_bounds = array<i64: 32, 128>}, {pipeline_mode = #tpu.pipeline_mode<synchronous>, transform_indices = @transform_3, window_bounds = array<i64: 1, 128>}, {pipeline_mode = #tpu.pipeline_mode<synchronous>, transform_indices = @transform_4, window_bounds = array<i64: 32, 64>}, {pipeline_mode = #tpu.pipeline_mode<synchronous>, transform_indices = @transform_5, window_bounds = array<i64: 1, 64>}, {pipeline_mode = #tpu.pipeline_mode<synchronous>, transform_indices = @transform_6, window_bounds = array<i64: 8, 8, 32>}, {pipeline_mode = #tpu.pipeline_mode<synchronous>, transform_indices = @transform_7, window_bounds = array<i64: 1, 32>}, {pipeline_mode = #tpu.pipeline_mode<synchronous>, transform_indices = @transform_8, window_bounds = array<i64: 32, 64>}, {pipeline_mode = #tpu.pipeline_mode<synchronous>, transform_indices = @transform_9, window_bounds = array<i64: 1, 64>}, {pipeline_mode = #tpu.pipeline_mode<synchronous>, transform_indices = @transform_10, window_bounds = array<i64: 64, 32>}, {pipeline_mode = #tpu.pipeline_mode<synchronous>, transform_indices = @transform_11, window_bounds = array<i64: 1, 32>}, {pipeline_mode = #tpu.pipeline_mode<synchronous>, transform_indices = @transform_12, window_bounds = array<i64: 1, 32>}, {pipeline_mode = #tpu.pipeline_mode<synchronous>, transform_indices = @transform_13, window_bounds = array<i64: 1, 32>}, {pipeline_mode = #tpu.pipeline_mode<synchronous>, transform_indices = @transform_14, window_bounds = array<i64: 1, 32>}, {pipeline_mode = #tpu.pipeline_mode<synchronous>, transform_indices = @transform_15, window_bounds = array<i64: 1, 32>}, {transform_indices = @transform_16, window_bounds = array<i64: 2, 8, 32>}]} {
    %c0 = arith.constant 0 : index
    %c0_0 = arith.constant 0 : index
    %c0_1 = arith.constant 0 : index
    %0 = vector.load %arg1[%c0, %c0_0, %c0_1] : memref<2x8x32xf32, #tpu.memory_space<vmem>>, vector<2x8x32xf32>
    %1 = vector.shape_cast %0 : vector<2x8x32xf32> to vector<16x32xf32>
    %c0_2 = arith.constant 0 : index
    %c0_3 = arith.constant 0 : index
    %c0_4 = arith.constant 0 : index
    %2 = vector.load %arg2[%c0_2, %c0_3, %c0_4] : memref<2x8x32xf32, #tpu.memory_space<vmem>>, vector<2x8x32xf32>
    %3 = vector.shape_cast %2 : vector<2x8x32xf32> to vector<16x32xf32>
    %c0_5 = arith.constant 0 : index
    %c0_6 = arith.constant 0 : index
    %4 = vector.load %arg3[%c0_5, %c0_6] : memref<32x128xf32, #tpu.memory_space<vmem>>, vector<32x128xf32>
    %cst = arith.constant dense<0.000000e+00> : vector<16x128xf32>
    %5 = tpu.matmul %1, %4, %cst {dimension_numbers = #tpu.dot_dimension_numbers<[1], [0], [0], [1], [0, 0, 1, 1], [], []>} : vector<16x32xf32>, vector<32x128xf32>, vector<16x128xf32> -> vector<16x128xf32>
    %c0_7 = arith.constant 0 : index
    %c0_8 = arith.constant 0 : index
    %6 = vector.load %arg4[%c0_7, %c0_8] : memref<1x128xf32, #tpu.memory_space<vmem>>, vector<1x128xf32>
    %7 = vector.broadcast %6 : vector<1x128xf32> to vector<16x128xf32>
    %8 = arith.addf %5, %7 : vector<16x128xf32>
    %c0_9 = arith.constant 0 : index
    %c0_10 = arith.constant 0 : index
    %9 = vector.load %arg5[%c0_9, %c0_10] : memref<32x64xf32, #tpu.memory_space<vmem>>, vector<32x64xf32>
    %cst_11 = arith.constant dense<0.000000e+00> : vector<16x64xf32>
    %10 = tpu.matmul %3, %9, %cst_11 {dimension_numbers = #tpu.dot_dimension_numbers<[1], [0], [0], [1], [0, 0, 1, 1], [], []>} : vector<16x32xf32>, vector<32x64xf32>, vector<16x64xf32> -> vector<16x64xf32>
    %c0_12 = arith.constant 0 : index
    %c0_13 = arith.constant 0 : index
    %11 = vector.load %arg6[%c0_12, %c0_13] : memref<1x64xf32, #tpu.memory_space<vmem>>, vector<1x64xf32>
    %12 = vector.broadcast %11 : vector<1x64xf32> to vector<16x64xf32>
    %13 = arith.addf %10, %12 : vector<16x64xf32>
    %14 = vector.extract_strided_slice %8 {offsets = [0, 0], sizes = [16, 32], strides = [1, 1]} : vector<16x128xf32> to vector<16x32xf32>
    %15 = vector.extract_strided_slice %8 {offsets = [0, 32], sizes = [16, 32], strides = [1, 1]} : vector<16x128xf32> to vector<16x32xf32>
    %16 = vector.extract_strided_slice %8 {offsets = [0, 64], sizes = [16, 32], strides = [1, 1]} : vector<16x128xf32> to vector<16x32xf32>
    %17 = vector.extract_strided_slice %8 {offsets = [0, 96], sizes = [16, 32], strides = [1, 1]} : vector<16x128xf32> to vector<16x32xf32>
    %18 = vector.extract_strided_slice %13 {offsets = [0, 0], sizes = [16, 32], strides = [1, 1]} : vector<16x64xf32> to vector<16x32xf32>
    %19 = vector.extract_strided_slice %13 {offsets = [0, 32], sizes = [16, 32], strides = [1, 1]} : vector<16x64xf32> to vector<16x32xf32>
    %20 = vector.extract_strided_slice %14 {offsets = [0, 0], sizes = [8, 32], strides = [1, 1]} : vector<16x32xf32> to vector<8x32xf32>
    %21 = vector.extract_strided_slice %18 {offsets = [0, 0], sizes = [8, 32], strides = [1, 1]} : vector<16x32xf32> to vector<8x32xf32>
    %22 = vector.extract_strided_slice %19 {offsets = [0, 0], sizes = [8, 32], strides = [1, 1]} : vector<16x32xf32> to vector<8x32xf32>
    %cst_14 = arith.constant 0.000000e+00 : f32
    %23 = vector.broadcast %cst_14 : f32 to vector<8x32xf32>
    %24 = vector.extract_strided_slice %20 {offsets = [0, 0], sizes = [8, 8], strides = [1, 1]} : vector<8x32xf32> to vector<8x8xf32>
    %25 = vector.extract_strided_slice %21 {offsets = [0, 0], sizes = [8, 8], strides = [1, 1]} : vector<8x32xf32> to vector<8x8xf32>
    %26 = tpu.transpose %25, [1, 0] : vector<8x8xf32> -> vector<8x8xf32>
    %cst_15 = arith.constant dense<0.000000e+00> : vector<8x8xf32>
    %27 = tpu.matmul %24, %26, %cst_15 {dimension_numbers = #tpu.dot_dimension_numbers<[1], [0], [0], [1], [0, 0, 1, 1], [], []>} : vector<8x8xf32>, vector<8x8xf32>, vector<8x8xf32> -> vector<8x8xf32>
    %cst_16 = arith.constant dense<0xFF800000> : vector<8xf32>
    %28 = vector.multi_reduction <maximumf>, %27, %cst_16 [1] : vector<8x8xf32> to vector<8xf32>
    %29 = vector.shape_cast %28 : vector<8xf32> to vector<8x1xf32>
    %30 = vector.broadcast %29 : vector<8x1xf32> to vector<8x8xf32>
    %31 = arith.subf %27, %30 : vector<8x8xf32>
    %32 = math.exp %31 : vector<8x8xf32>
    %cst_17 = arith.constant dense<0.000000e+00> : vector<8xf32>
    %33 = vector.multi_reduction <add>, %32, %cst_17 [1] : vector<8x8xf32> to vector<8xf32>
    %34 = vector.shape_cast %33 : vector<8xf32> to vector<8x1xf32>
    %35 = tpu.reciprocal %34 {approx = true} : vector<8x1xf32> -> vector<8x1xf32>
    %36 = vector.broadcast %35 : vector<8x1xf32> to vector<8x8xf32>
    %37 = arith.mulf %32, %36 : vector<8x8xf32>
    %38 = vector.extract_strided_slice %22 {offsets = [0, 0], sizes = [8, 8], strides = [1, 1]} : vector<8x32xf32> to vector<8x8xf32>
    %cst_18 = arith.constant dense<0.000000e+00> : vector<8x8xf32>
    %39 = tpu.matmul %37, %38, %cst_18 {dimension_numbers = #tpu.dot_dimension_numbers<[1], [0], [0], [1], [0, 0, 1, 1], [], []>} : vector<8x8xf32>, vector<8x8xf32>, vector<8x8xf32> -> vector<8x8xf32>
    %c0_19 = arith.constant 0 : index
    %c0_20 = arith.constant 0 : index
    %c0_21 = arith.constant 0 : index
    %40 = vector.load %arg7[%c0_19, %c0_20, %c0_21] : memref<8x8x32xf32, #tpu.memory_space<vmem>>, vector<1x8x32xf32>
    %41 = vector.shape_cast %40 : vector<1x8x32xf32> to vector<8x32xf32>
    %cst_22 = arith.constant dense<0.000000e+00> : vector<8x32xf32>
    %42 = tpu.matmul %39, %41, %cst_22 {dimension_numbers = #tpu.dot_dimension_numbers<[1], [0], [0], [1], [0, 0, 1, 1], [], []>} : vector<8x8xf32>, vector<8x32xf32>, vector<8x32xf32> -> vector<8x32xf32>
    %43 = arith.addf %23, %42 : vector<8x32xf32>
    %44 = vector.extract_strided_slice %20 {offsets = [0, 8], sizes = [8, 8], strides = [1, 1]} : vector<8x32xf32> to vector<8x8xf32>
    %45 = vector.extract_strided_slice %21 {offsets = [0, 8], sizes = [8, 8], strides = [1, 1]} : vector<8x32xf32> to vector<8x8xf32>
    %46 = tpu.transpose %45, [1, 0] : vector<8x8xf32> -> vector<8x8xf32>
    %cst_23 = arith.constant dense<0.000000e+00> : vector<8x8xf32>
    %47 = tpu.matmul %44, %46, %cst_23 {dimension_numbers = #tpu.dot_dimension_numbers<[1], [0], [0], [1], [0, 0, 1, 1], [], []>} : vector<8x8xf32>, vector<8x8xf32>, vector<8x8xf32> -> vector<8x8xf32>
    %cst_24 = arith.constant dense<0xFF800000> : vector<8xf32>
    %48 = vector.multi_reduction <maximumf>, %47, %cst_24 [1] : vector<8x8xf32> to vector<8xf32>
    %49 = vector.shape_cast %48 : vector<8xf32> to vector<8x1xf32>
    %50 = vector.broadcast %49 : vector<8x1xf32> to vector<8x8xf32>
    %51 = arith.subf %47, %50 : vector<8x8xf32>
    %52 = math.exp %51 : vector<8x8xf32>
    %cst_25 = arith.constant dense<0.000000e+00> : vector<8xf32>
    %53 = vector.multi_reduction <add>, %52, %cst_25 [1] : vector<8x8xf32> to vector<8xf32>
    %54 = vector.shape_cast %53 : vector<8xf32> to vector<8x1xf32>
    %55 = tpu.reciprocal %54 {approx = true} : vector<8x1xf32> -> vector<8x1xf32>
    %56 = vector.broadcast %55 : vector<8x1xf32> to vector<8x8xf32>
    %57 = arith.mulf %52, %56 : vector<8x8xf32>
    %58 = vector.extract_strided_slice %22 {offsets = [0, 8], sizes = [8, 8], strides = [1, 1]} : vector<8x32xf32> to vector<8x8xf32>
    %cst_26 = arith.constant dense<0.000000e+00> : vector<8x8xf32>
    %59 = tpu.matmul %57, %58, %cst_26 {dimension_numbers = #tpu.dot_dimension_numbers<[1], [0], [0], [1], [0, 0, 1, 1], [], []>} : vector<8x8xf32>, vector<8x8xf32>, vector<8x8xf32> -> vector<8x8xf32>
    %c1 = arith.constant 1 : index
    %c0_27 = arith.constant 0 : index
    %c0_28 = arith.constant 0 : index
    %60 = vector.load %arg7[%c1, %c0_27, %c0_28] : memref<8x8x32xf32, #tpu.memory_space<vmem>>, vector<1x8x32xf32>
    %61 = vector.shape_cast %60 : vector<1x8x32xf32> to vector<8x32xf32>
    %cst_29 = arith.constant dense<0.000000e+00> : vector<8x32xf32>
    %62 = tpu.matmul %59, %61, %cst_29 {dimension_numbers = #tpu.dot_dimension_numbers<[1], [0], [0], [1], [0, 0, 1, 1], [], []>} : vector<8x8xf32>, vector<8x32xf32>, vector<8x32xf32> -> vector<8x32xf32>
    %63 = arith.addf %43, %62 : vector<8x32xf32>
    %64 = vector.extract_strided_slice %20 {offsets = [0, 16], sizes = [8, 8], strides = [1, 1]} : vector<8x32xf32> to vector<8x8xf32>
    %65 = vector.extract_strided_slice %21 {offsets = [0, 16], sizes = [8, 8], strides = [1, 1]} : vector<8x32xf32> to vector<8x8xf32>
    %66 = tpu.transpose %65, [1, 0] : vector<8x8xf32> -> vector<8x8xf32>
    %cst_30 = arith.constant dense<0.000000e+00> : vector<8x8xf32>
    %67 = tpu.matmul %64, %66, %cst_30 {dimension_numbers = #tpu.dot_dimension_numbers<[1], [0], [0], [1], [0, 0, 1, 1], [], []>} : vector<8x8xf32>, vector<8x8xf32>, vector<8x8xf32> -> vector<8x8xf32>
    %cst_31 = arith.constant dense<0xFF800000> : vector<8xf32>
    %68 = vector.multi_reduction <maximumf>, %67, %cst_31 [1] : vector<8x8xf32> to vector<8xf32>
    %69 = vector.shape_cast %68 : vector<8xf32> to vector<8x1xf32>
    %70 = vector.broadcast %69 : vector<8x1xf32> to vector<8x8xf32>
    %71 = arith.subf %67, %70 : vector<8x8xf32>
    %72 = math.exp %71 : vector<8x8xf32>
    %cst_32 = arith.constant dense<0.000000e+00> : vector<8xf32>
    %73 = vector.multi_reduction <add>, %72, %cst_32 [1] : vector<8x8xf32> to vector<8xf32>
    %74 = vector.shape_cast %73 : vector<8xf32> to vector<8x1xf32>
    %75 = tpu.reciprocal %74 {approx = true} : vector<8x1xf32> -> vector<8x1xf32>
    %76 = vector.broadcast %75 : vector<8x1xf32> to vector<8x8xf32>
    %77 = arith.mulf %72, %76 : vector<8x8xf32>
    %78 = vector.extract_strided_slice %22 {offsets = [0, 16], sizes = [8, 8], strides = [1, 1]} : vector<8x32xf32> to vector<8x8xf32>
    %cst_33 = arith.constant dense<0.000000e+00> : vector<8x8xf32>
    %79 = tpu.matmul %77, %78, %cst_33 {dimension_numbers = #tpu.dot_dimension_numbers<[1], [0], [0], [1], [0, 0, 1, 1], [], []>} : vector<8x8xf32>, vector<8x8xf32>, vector<8x8xf32> -> vector<8x8xf32>
    %c2 = arith.constant 2 : index
    %c0_34 = arith.constant 0 : index
    %c0_35 = arith.constant 0 : index
    %80 = vector.load %arg7[%c2, %c0_34, %c0_35] : memref<8x8x32xf32, #tpu.memory_space<vmem>>, vector<1x8x32xf32>
    %81 = vector.shape_cast %80 : vector<1x8x32xf32> to vector<8x32xf32>
    %cst_36 = arith.constant dense<0.000000e+00> : vector<8x32xf32>
    %82 = tpu.matmul %79, %81, %cst_36 {dimension_numbers = #tpu.dot_dimension_numbers<[1], [0], [0], [1], [0, 0, 1, 1], [], []>} : vector<8x8xf32>, vector<8x32xf32>, vector<8x32xf32> -> vector<8x32xf32>
    %83 = arith.addf %63, %82 : vector<8x32xf32>
    %84 = vector.extract_strided_slice %20 {offsets = [0, 24], sizes = [8, 8], strides = [1, 1]} : vector<8x32xf32> to vector<8x8xf32>
    %85 = vector.extract_strided_slice %21 {offsets = [0, 24], sizes = [8, 8], strides = [1, 1]} : vector<8x32xf32> to vector<8x8xf32>
    %86 = tpu.transpose %85, [1, 0] : vector<8x8xf32> -> vector<8x8xf32>
    %cst_37 = arith.constant dense<0.000000e+00> : vector<8x8xf32>
    %87 = tpu.matmul %84, %86, %cst_37 {dimension_numbers = #tpu.dot_dimension_numbers<[1], [0], [0], [1], [0, 0, 1, 1], [], []>} : vector<8x8xf32>, vector<8x8xf32>, vector<8x8xf32> -> vector<8x8xf32>
    %cst_38 = arith.constant dense<0xFF800000> : vector<8xf32>
    %88 = vector.multi_reduction <maximumf>, %87, %cst_38 [1] : vector<8x8xf32> to vector<8xf32>
    %89 = vector.shape_cast %88 : vector<8xf32> to vector<8x1xf32>
    %90 = vector.broadcast %89 : vector<8x1xf32> to vector<8x8xf32>
    %91 = arith.subf %87, %90 : vector<8x8xf32>
    %92 = math.exp %91 : vector<8x8xf32>
    %cst_39 = arith.constant dense<0.000000e+00> : vector<8xf32>
    %93 = vector.multi_reduction <add>, %92, %cst_39 [1] : vector<8x8xf32> to vector<8xf32>
    %94 = vector.shape_cast %93 : vector<8xf32> to vector<8x1xf32>
    %95 = tpu.reciprocal %94 {approx = true} : vector<8x1xf32> -> vector<8x1xf32>
    %96 = vector.broadcast %95 : vector<8x1xf32> to vector<8x8xf32>
    %97 = arith.mulf %92, %96 : vector<8x8xf32>
    %98 = vector.extract_strided_slice %22 {offsets = [0, 24], sizes = [8, 8], strides = [1, 1]} : vector<8x32xf32> to vector<8x8xf32>
    %cst_40 = arith.constant dense<0.000000e+00> : vector<8x8xf32>
    %99 = tpu.matmul %97, %98, %cst_40 {dimension_numbers = #tpu.dot_dimension_numbers<[1], [0], [0], [1], [0, 0, 1, 1], [], []>} : vector<8x8xf32>, vector<8x8xf32>, vector<8x8xf32> -> vector<8x8xf32>
    %c3 = arith.constant 3 : index
    %c0_41 = arith.constant 0 : index
    %c0_42 = arith.constant 0 : index
    %100 = vector.load %arg7[%c3, %c0_41, %c0_42] : memref<8x8x32xf32, #tpu.memory_space<vmem>>, vector<1x8x32xf32>
    %101 = vector.shape_cast %100 : vector<1x8x32xf32> to vector<8x32xf32>
    %cst_43 = arith.constant dense<0.000000e+00> : vector<8x32xf32>
    %102 = tpu.matmul %99, %101, %cst_43 {dimension_numbers = #tpu.dot_dimension_numbers<[1], [0], [0], [1], [0, 0, 1, 1], [], []>} : vector<8x8xf32>, vector<8x32xf32>, vector<8x32xf32> -> vector<8x32xf32>
    %103 = arith.addf %83, %102 : vector<8x32xf32>
    %104 = vector.extract_strided_slice %15 {offsets = [0, 0], sizes = [8, 32], strides = [1, 1]} : vector<16x32xf32> to vector<8x32xf32>
    %105 = vector.extract_strided_slice %16 {offsets = [0, 0], sizes = [8, 32], strides = [1, 1]} : vector<16x32xf32> to vector<8x32xf32>
    %106 = vector.extract_strided_slice %17 {offsets = [0, 0], sizes = [8, 32], strides = [1, 1]} : vector<16x32xf32> to vector<8x32xf32>
    %cst_44 = arith.constant 0.000000e+00 : f32
    %107 = vector.broadcast %cst_44 : f32 to vector<8x32xf32>
    %108 = vector.extract_strided_slice %104 {offsets = [0, 0], sizes = [8, 8], strides = [1, 1]} : vector<8x32xf32> to vector<8x8xf32>
    %109 = vector.extract_strided_slice %105 {offsets = [0, 0], sizes = [8, 8], strides = [1, 1]} : vector<8x32xf32> to vector<8x8xf32>
    %110 = tpu.transpose %109, [1, 0] : vector<8x8xf32> -> vector<8x8xf32>
    %cst_45 = arith.constant dense<0.000000e+00> : vector<8x8xf32>
    %111 = tpu.matmul %108, %110, %cst_45 {dimension_numbers = #tpu.dot_dimension_numbers<[1], [0], [0], [1], [0, 0, 1, 1], [], []>} : vector<8x8xf32>, vector<8x8xf32>, vector<8x8xf32> -> vector<8x8xf32>
    %cst_46 = arith.constant dense<0xFF800000> : vector<8xf32>
    %112 = vector.multi_reduction <maximumf>, %111, %cst_46 [1] : vector<8x8xf32> to vector<8xf32>
    %113 = vector.shape_cast %112 : vector<8xf32> to vector<8x1xf32>
    %114 = vector.broadcast %113 : vector<8x1xf32> to vector<8x8xf32>
    %115 = arith.subf %111, %114 : vector<8x8xf32>
    %116 = math.exp %115 : vector<8x8xf32>
    %cst_47 = arith.constant dense<0.000000e+00> : vector<8xf32>
    %117 = vector.multi_reduction <add>, %116, %cst_47 [1] : vector<8x8xf32> to vector<8xf32>
    %118 = vector.shape_cast %117 : vector<8xf32> to vector<8x1xf32>
    %119 = tpu.reciprocal %118 {approx = true} : vector<8x1xf32> -> vector<8x1xf32>
    %120 = vector.broadcast %119 : vector<8x1xf32> to vector<8x8xf32>
    %121 = arith.mulf %116, %120 : vector<8x8xf32>
    %122 = vector.extract_strided_slice %106 {offsets = [0, 0], sizes = [8, 8], strides = [1, 1]} : vector<8x32xf32> to vector<8x8xf32>
    %cst_48 = arith.constant dense<0.000000e+00> : vector<8x8xf32>
    %123 = tpu.matmul %121, %122, %cst_48 {dimension_numbers = #tpu.dot_dimension_numbers<[1], [0], [0], [1], [0, 0, 1, 1], [], []>} : vector<8x8xf32>, vector<8x8xf32>, vector<8x8xf32> -> vector<8x8xf32>
    %c4 = arith.constant 4 : index
    %c0_49 = arith.constant 0 : index
    %c0_50 = arith.constant 0 : index
    %124 = vector.load %arg7[%c4, %c0_49, %c0_50] : memref<8x8x32xf32, #tpu.memory_space<vmem>>, vector<1x8x32xf32>
    %125 = vector.shape_cast %124 : vector<1x8x32xf32> to vector<8x32xf32>
    %cst_51 = arith.constant dense<0.000000e+00> : vector<8x32xf32>
    %126 = tpu.matmul %123, %125, %cst_51 {dimension_numbers = #tpu.dot_dimension_numbers<[1], [0], [0], [1], [0, 0, 1, 1], [], []>} : vector<8x8xf32>, vector<8x32xf32>, vector<8x32xf32> -> vector<8x32xf32>
    %127 = arith.addf %107, %126 : vector<8x32xf32>
    %128 = vector.extract_strided_slice %104 {offsets = [0, 8], sizes = [8, 8], strides = [1, 1]} : vector<8x32xf32> to vector<8x8xf32>
    %129 = vector.extract_strided_slice %105 {offsets = [0, 8], sizes = [8, 8], strides = [1, 1]} : vector<8x32xf32> to vector<8x8xf32>
    %130 = tpu.transpose %129, [1, 0] : vector<8x8xf32> -> vector<8x8xf32>
    %cst_52 = arith.constant dense<0.000000e+00> : vector<8x8xf32>
    %131 = tpu.matmul %128, %130, %cst_52 {dimension_numbers = #tpu.dot_dimension_numbers<[1], [0], [0], [1], [0, 0, 1, 1], [], []>} : vector<8x8xf32>, vector<8x8xf32>, vector<8x8xf32> -> vector<8x8xf32>
    %cst_53 = arith.constant dense<0xFF800000> : vector<8xf32>
    %132 = vector.multi_reduction <maximumf>, %131, %cst_53 [1] : vector<8x8xf32> to vector<8xf32>
    %133 = vector.shape_cast %132 : vector<8xf32> to vector<8x1xf32>
    %134 = vector.broadcast %133 : vector<8x1xf32> to vector<8x8xf32>
    %135 = arith.subf %131, %134 : vector<8x8xf32>
    %136 = math.exp %135 : vector<8x8xf32>
    %cst_54 = arith.constant dense<0.000000e+00> : vector<8xf32>
    %137 = vector.multi_reduction <add>, %136, %cst_54 [1] : vector<8x8xf32> to vector<8xf32>
    %138 = vector.shape_cast %137 : vector<8xf32> to vector<8x1xf32>
    %139 = tpu.reciprocal %138 {approx = true} : vector<8x1xf32> -> vector<8x1xf32>
    %140 = vector.broadcast %139 : vector<8x1xf32> to vector<8x8xf32>
    %141 = arith.mulf %136, %140 : vector<8x8xf32>
    %142 = vector.extract_strided_slice %106 {offsets = [0, 8], sizes = [8, 8], strides = [1, 1]} : vector<8x32xf32> to vector<8x8xf32>
    %cst_55 = arith.constant dense<0.000000e+00> : vector<8x8xf32>
    %143 = tpu.matmul %141, %142, %cst_55 {dimension_numbers = #tpu.dot_dimension_numbers<[1], [0], [0], [1], [0, 0, 1, 1], [], []>} : vector<8x8xf32>, vector<8x8xf32>, vector<8x8xf32> -> vector<8x8xf32>
    %c5 = arith.constant 5 : index
    %c0_56 = arith.constant 0 : index
    %c0_57 = arith.constant 0 : index
    %144 = vector.load %arg7[%c5, %c0_56, %c0_57] : memref<8x8x32xf32, #tpu.memory_space<vmem>>, vector<1x8x32xf32>
    %145 = vector.shape_cast %144 : vector<1x8x32xf32> to vector<8x32xf32>
    %cst_58 = arith.constant dense<0.000000e+00> : vector<8x32xf32>
    %146 = tpu.matmul %143, %145, %cst_58 {dimension_numbers = #tpu.dot_dimension_numbers<[1], [0], [0], [1], [0, 0, 1, 1], [], []>} : vector<8x8xf32>, vector<8x32xf32>, vector<8x32xf32> -> vector<8x32xf32>
    %147 = arith.addf %127, %146 : vector<8x32xf32>
    %148 = vector.extract_strided_slice %104 {offsets = [0, 16], sizes = [8, 8], strides = [1, 1]} : vector<8x32xf32> to vector<8x8xf32>
    %149 = vector.extract_strided_slice %105 {offsets = [0, 16], sizes = [8, 8], strides = [1, 1]} : vector<8x32xf32> to vector<8x8xf32>
    %150 = tpu.transpose %149, [1, 0] : vector<8x8xf32> -> vector<8x8xf32>
    %cst_59 = arith.constant dense<0.000000e+00> : vector<8x8xf32>
    %151 = tpu.matmul %148, %150, %cst_59 {dimension_numbers = #tpu.dot_dimension_numbers<[1], [0], [0], [1], [0, 0, 1, 1], [], []>} : vector<8x8xf32>, vector<8x8xf32>, vector<8x8xf32> -> vector<8x8xf32>
    %cst_60 = arith.constant dense<0xFF800000> : vector<8xf32>
    %152 = vector.multi_reduction <maximumf>, %151, %cst_60 [1] : vector<8x8xf32> to vector<8xf32>
    %153 = vector.shape_cast %152 : vector<8xf32> to vector<8x1xf32>
    %154 = vector.broadcast %153 : vector<8x1xf32> to vector<8x8xf32>
    %155 = arith.subf %151, %154 : vector<8x8xf32>
    %156 = math.exp %155 : vector<8x8xf32>
    %cst_61 = arith.constant dense<0.000000e+00> : vector<8xf32>
    %157 = vector.multi_reduction <add>, %156, %cst_61 [1] : vector<8x8xf32> to vector<8xf32>
    %158 = vector.shape_cast %157 : vector<8xf32> to vector<8x1xf32>
    %159 = tpu.reciprocal %158 {approx = true} : vector<8x1xf32> -> vector<8x1xf32>
    %160 = vector.broadcast %159 : vector<8x1xf32> to vector<8x8xf32>
    %161 = arith.mulf %156, %160 : vector<8x8xf32>
    %162 = vector.extract_strided_slice %106 {offsets = [0, 16], sizes = [8, 8], strides = [1, 1]} : vector<8x32xf32> to vector<8x8xf32>
    %cst_62 = arith.constant dense<0.000000e+00> : vector<8x8xf32>
    %163 = tpu.matmul %161, %162, %cst_62 {dimension_numbers = #tpu.dot_dimension_numbers<[1], [0], [0], [1], [0, 0, 1, 1], [], []>} : vector<8x8xf32>, vector<8x8xf32>, vector<8x8xf32> -> vector<8x8xf32>
    %c6 = arith.constant 6 : index
    %c0_63 = arith.constant 0 : index
    %c0_64 = arith.constant 0 : index
    %164 = vector.load %arg7[%c6, %c0_63, %c0_64] : memref<8x8x32xf32, #tpu.memory_space<vmem>>, vector<1x8x32xf32>
    %165 = vector.shape_cast %164 : vector<1x8x32xf32> to vector<8x32xf32>
    %cst_65 = arith.constant dense<0.000000e+00> : vector<8x32xf32>
    %166 = tpu.matmul %163, %165, %cst_65 {dimension_numbers = #tpu.dot_dimension_numbers<[1], [0], [0], [1], [0, 0, 1, 1], [], []>} : vector<8x8xf32>, vector<8x32xf32>, vector<8x32xf32> -> vector<8x32xf32>
    %167 = arith.addf %147, %166 : vector<8x32xf32>
    %168 = vector.extract_strided_slice %104 {offsets = [0, 24], sizes = [8, 8], strides = [1, 1]} : vector<8x32xf32> to vector<8x8xf32>
    %169 = vector.extract_strided_slice %105 {offsets = [0, 24], sizes = [8, 8], strides = [1, 1]} : vector<8x32xf32> to vector<8x8xf32>
    %170 = tpu.transpose %169, [1, 0] : vector<8x8xf32> -> vector<8x8xf32>
    %cst_66 = arith.constant dense<0.000000e+00> : vector<8x8xf32>
    %171 = tpu.matmul %168, %170, %cst_66 {dimension_numbers = #tpu.dot_dimension_numbers<[1], [0], [0], [1], [0, 0, 1, 1], [], []>} : vector<8x8xf32>, vector<8x8xf32>, vector<8x8xf32> -> vector<8x8xf32>
    %cst_67 = arith.constant dense<0xFF800000> : vector<8xf32>
    %172 = vector.multi_reduction <maximumf>, %171, %cst_67 [1] : vector<8x8xf32> to vector<8xf32>
    %173 = vector.shape_cast %172 : vector<8xf32> to vector<8x1xf32>
    %174 = vector.broadcast %173 : vector<8x1xf32> to vector<8x8xf32>
    %175 = arith.subf %171, %174 : vector<8x8xf32>
    %176 = math.exp %175 : vector<8x8xf32>
    %cst_68 = arith.constant dense<0.000000e+00> : vector<8xf32>
    %177 = vector.multi_reduction <add>, %176, %cst_68 [1] : vector<8x8xf32> to vector<8xf32>
    %178 = vector.shape_cast %177 : vector<8xf32> to vector<8x1xf32>
    %179 = tpu.reciprocal %178 {approx = true} : vector<8x1xf32> -> vector<8x1xf32>
    %180 = vector.broadcast %179 : vector<8x1xf32> to vector<8x8xf32>
    %181 = arith.mulf %176, %180 : vector<8x8xf32>
    %182 = vector.extract_strided_slice %106 {offsets = [0, 24], sizes = [8, 8], strides = [1, 1]} : vector<8x32xf32> to vector<8x8xf32>
    %cst_69 = arith.constant dense<0.000000e+00> : vector<8x8xf32>
    %183 = tpu.matmul %181, %182, %cst_69 {dimension_numbers = #tpu.dot_dimension_numbers<[1], [0], [0], [1], [0, 0, 1, 1], [], []>} : vector<8x8xf32>, vector<8x8xf32>, vector<8x8xf32> -> vector<8x8xf32>
    %c7 = arith.constant 7 : index
    %c0_70 = arith.constant 0 : index
    %c0_71 = arith.constant 0 : index
    %184 = vector.load %arg7[%c7, %c0_70, %c0_71] : memref<8x8x32xf32, #tpu.memory_space<vmem>>, vector<1x8x32xf32>
    %185 = vector.shape_cast %184 : vector<1x8x32xf32> to vector<8x32xf32>
    %cst_72 = arith.constant dense<0.000000e+00> : vector<8x32xf32>
    %186 = tpu.matmul %183, %185, %cst_72 {dimension_numbers = #tpu.dot_dimension_numbers<[1], [0], [0], [1], [0, 0, 1, 1], [], []>} : vector<8x8xf32>, vector<8x32xf32>, vector<8x32xf32> -> vector<8x32xf32>
    %187 = arith.addf %167, %186 : vector<8x32xf32>
    %188 = arith.addf %103, %187 : vector<8x32xf32>
    %189 = vector.extract_strided_slice %14 {offsets = [8, 0], sizes = [8, 32], strides = [1, 1]} : vector<16x32xf32> to vector<8x32xf32>
    %190 = vector.extract_strided_slice %18 {offsets = [8, 0], sizes = [8, 32], strides = [1, 1]} : vector<16x32xf32> to vector<8x32xf32>
    %191 = vector.extract_strided_slice %19 {offsets = [8, 0], sizes = [8, 32], strides = [1, 1]} : vector<16x32xf32> to vector<8x32xf32>
    %cst_73 = arith.constant 0.000000e+00 : f32
    %192 = vector.broadcast %cst_73 : f32 to vector<8x32xf32>
    %193 = vector.extract_strided_slice %189 {offsets = [0, 0], sizes = [8, 8], strides = [1, 1]} : vector<8x32xf32> to vector<8x8xf32>
    %194 = vector.extract_strided_slice %190 {offsets = [0, 0], sizes = [8, 8], strides = [1, 1]} : vector<8x32xf32> to vector<8x8xf32>
    %195 = tpu.transpose %194, [1, 0] : vector<8x8xf32> -> vector<8x8xf32>
    %cst_74 = arith.constant dense<0.000000e+00> : vector<8x8xf32>
    %196 = tpu.matmul %193, %195, %cst_74 {dimension_numbers = #tpu.dot_dimension_numbers<[1], [0], [0], [1], [0, 0, 1, 1], [], []>} : vector<8x8xf32>, vector<8x8xf32>, vector<8x8xf32> -> vector<8x8xf32>
    %cst_75 = arith.constant dense<0xFF800000> : vector<8xf32>
    %197 = vector.multi_reduction <maximumf>, %196, %cst_75 [1] : vector<8x8xf32> to vector<8xf32>
    %198 = vector.shape_cast %197 : vector<8xf32> to vector<8x1xf32>
    %199 = vector.broadcast %198 : vector<8x1xf32> to vector<8x8xf32>
    %200 = arith.subf %196, %199 : vector<8x8xf32>
    %201 = math.exp %200 : vector<8x8xf32>
    %cst_76 = arith.constant dense<0.000000e+00> : vector<8xf32>
    %202 = vector.multi_reduction <add>, %201, %cst_76 [1] : vector<8x8xf32> to vector<8xf32>
    %203 = vector.shape_cast %202 : vector<8xf32> to vector<8x1xf32>
    %204 = tpu.reciprocal %203 {approx = true} : vector<8x1xf32> -> vector<8x1xf32>
    %205 = vector.broadcast %204 : vector<8x1xf32> to vector<8x8xf32>
    %206 = arith.mulf %201, %205 : vector<8x8xf32>
    %207 = vector.extract_strided_slice %191 {offsets = [0, 0], sizes = [8, 8], strides = [1, 1]} : vector<8x32xf32> to vector<8x8xf32>
    %cst_77 = arith.constant dense<0.000000e+00> : vector<8x8xf32>
    %208 = tpu.matmul %206, %207, %cst_77 {dimension_numbers = #tpu.dot_dimension_numbers<[1], [0], [0], [1], [0, 0, 1, 1], [], []>} : vector<8x8xf32>, vector<8x8xf32>, vector<8x8xf32> -> vector<8x8xf32>
    %c0_78 = arith.constant 0 : index
    %c0_79 = arith.constant 0 : index
    %c0_80 = arith.constant 0 : index
    %209 = vector.load %arg7[%c0_78, %c0_79, %c0_80] : memref<8x8x32xf32, #tpu.memory_space<vmem>>, vector<1x8x32xf32>
    %210 = vector.shape_cast %209 : vector<1x8x32xf32> to vector<8x32xf32>
    %cst_81 = arith.constant dense<0.000000e+00> : vector<8x32xf32>
    %211 = tpu.matmul %208, %210, %cst_81 {dimension_numbers = #tpu.dot_dimension_numbers<[1], [0], [0], [1], [0, 0, 1, 1], [], []>} : vector<8x8xf32>, vector<8x32xf32>, vector<8x32xf32> -> vector<8x32xf32>
    %212 = arith.addf %192, %211 : vector<8x32xf32>
    %213 = vector.extract_strided_slice %189 {offsets = [0, 8], sizes = [8, 8], strides = [1, 1]} : vector<8x32xf32> to vector<8x8xf32>
    %214 = vector.extract_strided_slice %190 {offsets = [0, 8], sizes = [8, 8], strides = [1, 1]} : vector<8x32xf32> to vector<8x8xf32>
    %215 = tpu.transpose %214, [1, 0] : vector<8x8xf32> -> vector<8x8xf32>
    %cst_82 = arith.constant dense<0.000000e+00> : vector<8x8xf32>
    %216 = tpu.matmul %213, %215, %cst_82 {dimension_numbers = #tpu.dot_dimension_numbers<[1], [0], [0], [1], [0, 0, 1, 1], [], []>} : vector<8x8xf32>, vector<8x8xf32>, vector<8x8xf32> -> vector<8x8xf32>
    %cst_83 = arith.constant dense<0xFF800000> : vector<8xf32>
    %217 = vector.multi_reduction <maximumf>, %216, %cst_83 [1] : vector<8x8xf32> to vector<8xf32>
    %218 = vector.shape_cast %217 : vector<8xf32> to vector<8x1xf32>
    %219 = vector.broadcast %218 : vector<8x1xf32> to vector<8x8xf32>
    %220 = arith.subf %216, %219 : vector<8x8xf32>
    %221 = math.exp %220 : vector<8x8xf32>
    %cst_84 = arith.constant dense<0.000000e+00> : vector<8xf32>
    %222 = vector.multi_reduction <add>, %221, %cst_84 [1] : vector<8x8xf32> to vector<8xf32>
    %223 = vector.shape_cast %222 : vector<8xf32> to vector<8x1xf32>
    %224 = tpu.reciprocal %223 {approx = true} : vector<8x1xf32> -> vector<8x1xf32>
    %225 = vector.broadcast %224 : vector<8x1xf32> to vector<8x8xf32>
    %226 = arith.mulf %221, %225 : vector<8x8xf32>
    %227 = vector.extract_strided_slice %191 {offsets = [0, 8], sizes = [8, 8], strides = [1, 1]} : vector<8x32xf32> to vector<8x8xf32>
    %cst_85 = arith.constant dense<0.000000e+00> : vector<8x8xf32>
    %228 = tpu.matmul %226, %227, %cst_85 {dimension_numbers = #tpu.dot_dimension_numbers<[1], [0], [0], [1], [0, 0, 1, 1], [], []>} : vector<8x8xf32>, vector<8x8xf32>, vector<8x8xf32> -> vector<8x8xf32>
    %c1_86 = arith.constant 1 : index
    %c0_87 = arith.constant 0 : index
    %c0_88 = arith.constant 0 : index
    %229 = vector.load %arg7[%c1_86, %c0_87, %c0_88] : memref<8x8x32xf32, #tpu.memory_space<vmem>>, vector<1x8x32xf32>
    %230 = vector.shape_cast %229 : vector<1x8x32xf32> to vector<8x32xf32>
    %cst_89 = arith.constant dense<0.000000e+00> : vector<8x32xf32>
    %231 = tpu.matmul %228, %230, %cst_89 {dimension_numbers = #tpu.dot_dimension_numbers<[1], [0], [0], [1], [0, 0, 1, 1], [], []>} : vector<8x8xf32>, vector<8x32xf32>, vector<8x32xf32> -> vector<8x32xf32>
    %232 = arith.addf %212, %231 : vector<8x32xf32>
    %233 = vector.extract_strided_slice %189 {offsets = [0, 16], sizes = [8, 8], strides = [1, 1]} : vector<8x32xf32> to vector<8x8xf32>
    %234 = vector.extract_strided_slice %190 {offsets = [0, 16], sizes = [8, 8], strides = [1, 1]} : vector<8x32xf32> to vector<8x8xf32>
    %235 = tpu.transpose %234, [1, 0] : vector<8x8xf32> -> vector<8x8xf32>
    %cst_90 = arith.constant dense<0.000000e+00> : vector<8x8xf32>
    %236 = tpu.matmul %233, %235, %cst_90 {dimension_numbers = #tpu.dot_dimension_numbers<[1], [0], [0], [1], [0, 0, 1, 1], [], []>} : vector<8x8xf32>, vector<8x8xf32>, vector<8x8xf32> -> vector<8x8xf32>
    %cst_91 = arith.constant dense<0xFF800000> : vector<8xf32>
    %237 = vector.multi_reduction <maximumf>, %236, %cst_91 [1] : vector<8x8xf32> to vector<8xf32>
    %238 = vector.shape_cast %237 : vector<8xf32> to vector<8x1xf32>
    %239 = vector.broadcast %238 : vector<8x1xf32> to vector<8x8xf32>
    %240 = arith.subf %236, %239 : vector<8x8xf32>
    %241 = math.exp %240 : vector<8x8xf32>
    %cst_92 = arith.constant dense<0.000000e+00> : vector<8xf32>
    %242 = vector.multi_reduction <add>, %241, %cst_92 [1] : vector<8x8xf32> to vector<8xf32>
    %243 = vector.shape_cast %242 : vector<8xf32> to vector<8x1xf32>
    %244 = tpu.reciprocal %243 {approx = true} : vector<8x1xf32> -> vector<8x1xf32>
    %245 = vector.broadcast %244 : vector<8x1xf32> to vector<8x8xf32>
    %246 = arith.mulf %241, %245 : vector<8x8xf32>
    %247 = vector.extract_strided_slice %191 {offsets = [0, 16], sizes = [8, 8], strides = [1, 1]} : vector<8x32xf32> to vector<8x8xf32>
    %cst_93 = arith.constant dense<0.000000e+00> : vector<8x8xf32>
    %248 = tpu.matmul %246, %247, %cst_93 {dimension_numbers = #tpu.dot_dimension_numbers<[1], [0], [0], [1], [0, 0, 1, 1], [], []>} : vector<8x8xf32>, vector<8x8xf32>, vector<8x8xf32> -> vector<8x8xf32>
    %c2_94 = arith.constant 2 : index
    %c0_95 = arith.constant 0 : index
    %c0_96 = arith.constant 0 : index
    %249 = vector.load %arg7[%c2_94, %c0_95, %c0_96] : memref<8x8x32xf32, #tpu.memory_space<vmem>>, vector<1x8x32xf32>
    %250 = vector.shape_cast %249 : vector<1x8x32xf32> to vector<8x32xf32>
    %cst_97 = arith.constant dense<0.000000e+00> : vector<8x32xf32>
    %251 = tpu.matmul %248, %250, %cst_97 {dimension_numbers = #tpu.dot_dimension_numbers<[1], [0], [0], [1], [0, 0, 1, 1], [], []>} : vector<8x8xf32>, vector<8x32xf32>, vector<8x32xf32> -> vector<8x32xf32>
    %252 = arith.addf %232, %251 : vector<8x32xf32>
    %253 = vector.extract_strided_slice %189 {offsets = [0, 24], sizes = [8, 8], strides = [1, 1]} : vector<8x32xf32> to vector<8x8xf32>
    %254 = vector.extract_strided_slice %190 {offsets = [0, 24], sizes = [8, 8], strides = [1, 1]} : vector<8x32xf32> to vector<8x8xf32>
    %255 = tpu.transpose %254, [1, 0] : vector<8x8xf32> -> vector<8x8xf32>
    %cst_98 = arith.constant dense<0.000000e+00> : vector<8x8xf32>
    %256 = tpu.matmul %253, %255, %cst_98 {dimension_numbers = #tpu.dot_dimension_numbers<[1], [0], [0], [1], [0, 0, 1, 1], [], []>} : vector<8x8xf32>, vector<8x8xf32>, vector<8x8xf32> -> vector<8x8xf32>
    %cst_99 = arith.constant dense<0xFF800000> : vector<8xf32>
    %257 = vector.multi_reduction <maximumf>, %256, %cst_99 [1] : vector<8x8xf32> to vector<8xf32>
    %258 = vector.shape_cast %257 : vector<8xf32> to vector<8x1xf32>
    %259 = vector.broadcast %258 : vector<8x1xf32> to vector<8x8xf32>
    %260 = arith.subf %256, %259 : vector<8x8xf32>
    %261 = math.exp %260 : vector<8x8xf32>
    %cst_100 = arith.constant dense<0.000000e+00> : vector<8xf32>
    %262 = vector.multi_reduction <add>, %261, %cst_100 [1] : vector<8x8xf32> to vector<8xf32>
    %263 = vector.shape_cast %262 : vector<8xf32> to vector<8x1xf32>
    %264 = tpu.reciprocal %263 {approx = true} : vector<8x1xf32> -> vector<8x1xf32>
    %265 = vector.broadcast %264 : vector<8x1xf32> to vector<8x8xf32>
    %266 = arith.mulf %261, %265 : vector<8x8xf32>
    %267 = vector.extract_strided_slice %191 {offsets = [0, 24], sizes = [8, 8], strides = [1, 1]} : vector<8x32xf32> to vector<8x8xf32>
    %cst_101 = arith.constant dense<0.000000e+00> : vector<8x8xf32>
    %268 = tpu.matmul %266, %267, %cst_101 {dimension_numbers = #tpu.dot_dimension_numbers<[1], [0], [0], [1], [0, 0, 1, 1], [], []>} : vector<8x8xf32>, vector<8x8xf32>, vector<8x8xf32> -> vector<8x8xf32>
    %c3_102 = arith.constant 3 : index
    %c0_103 = arith.constant 0 : index
    %c0_104 = arith.constant 0 : index
    %269 = vector.load %arg7[%c3_102, %c0_103, %c0_104] : memref<8x8x32xf32, #tpu.memory_space<vmem>>, vector<1x8x32xf32>
    %270 = vector.shape_cast %269 : vector<1x8x32xf32> to vector<8x32xf32>
    %cst_105 = arith.constant dense<0.000000e+00> : vector<8x32xf32>
    %271 = tpu.matmul %268, %270, %cst_105 {dimension_numbers = #tpu.dot_dimension_numbers<[1], [0], [0], [1], [0, 0, 1, 1], [], []>} : vector<8x8xf32>, vector<8x32xf32>, vector<8x32xf32> -> vector<8x32xf32>
    %272 = arith.addf %252, %271 : vector<8x32xf32>
    %273 = vector.extract_strided_slice %15 {offsets = [8, 0], sizes = [8, 32], strides = [1, 1]} : vector<16x32xf32> to vector<8x32xf32>
    %274 = vector.extract_strided_slice %16 {offsets = [8, 0], sizes = [8, 32], strides = [1, 1]} : vector<16x32xf32> to vector<8x32xf32>
    %275 = vector.extract_strided_slice %17 {offsets = [8, 0], sizes = [8, 32], strides = [1, 1]} : vector<16x32xf32> to vector<8x32xf32>
    %cst_106 = arith.constant 0.000000e+00 : f32
    %276 = vector.broadcast %cst_106 : f32 to vector<8x32xf32>
    %277 = vector.extract_strided_slice %273 {offsets = [0, 0], sizes = [8, 8], strides = [1, 1]} : vector<8x32xf32> to vector<8x8xf32>
    %278 = vector.extract_strided_slice %274 {offsets = [0, 0], sizes = [8, 8], strides = [1, 1]} : vector<8x32xf32> to vector<8x8xf32>
    %279 = tpu.transpose %278, [1, 0] : vector<8x8xf32> -> vector<8x8xf32>
    %cst_107 = arith.constant dense<0.000000e+00> : vector<8x8xf32>
    %280 = tpu.matmul %277, %279, %cst_107 {dimension_numbers = #tpu.dot_dimension_numbers<[1], [0], [0], [1], [0, 0, 1, 1], [], []>} : vector<8x8xf32>, vector<8x8xf32>, vector<8x8xf32> -> vector<8x8xf32>
    %cst_108 = arith.constant dense<0xFF800000> : vector<8xf32>
    %281 = vector.multi_reduction <maximumf>, %280, %cst_108 [1] : vector<8x8xf32> to vector<8xf32>
    %282 = vector.shape_cast %281 : vector<8xf32> to vector<8x1xf32>
    %283 = vector.broadcast %282 : vector<8x1xf32> to vector<8x8xf32>
    %284 = arith.subf %280, %283 : vector<8x8xf32>
    %285 = math.exp %284 : vector<8x8xf32>
    %cst_109 = arith.constant dense<0.000000e+00> : vector<8xf32>
    %286 = vector.multi_reduction <add>, %285, %cst_109 [1] : vector<8x8xf32> to vector<8xf32>
    %287 = vector.shape_cast %286 : vector<8xf32> to vector<8x1xf32>
    %288 = tpu.reciprocal %287 {approx = true} : vector<8x1xf32> -> vector<8x1xf32>
    %289 = vector.broadcast %288 : vector<8x1xf32> to vector<8x8xf32>
    %290 = arith.mulf %285, %289 : vector<8x8xf32>
    %291 = vector.extract_strided_slice %275 {offsets = [0, 0], sizes = [8, 8], strides = [1, 1]} : vector<8x32xf32> to vector<8x8xf32>
    %cst_110 = arith.constant dense<0.000000e+00> : vector<8x8xf32>
    %292 = tpu.matmul %290, %291, %cst_110 {dimension_numbers = #tpu.dot_dimension_numbers<[1], [0], [0], [1], [0, 0, 1, 1], [], []>} : vector<8x8xf32>, vector<8x8xf32>, vector<8x8xf32> -> vector<8x8xf32>
    %c4_111 = arith.constant 4 : index
    %c0_112 = arith.constant 0 : index
    %c0_113 = arith.constant 0 : index
    %293 = vector.load %arg7[%c4_111, %c0_112, %c0_113] : memref<8x8x32xf32, #tpu.memory_space<vmem>>, vector<1x8x32xf32>
    %294 = vector.shape_cast %293 : vector<1x8x32xf32> to vector<8x32xf32>
    %cst_114 = arith.constant dense<0.000000e+00> : vector<8x32xf32>
    %295 = tpu.matmul %292, %294, %cst_114 {dimension_numbers = #tpu.dot_dimension_numbers<[1], [0], [0], [1], [0, 0, 1, 1], [], []>} : vector<8x8xf32>, vector<8x32xf32>, vector<8x32xf32> -> vector<8x32xf32>
    %296 = arith.addf %276, %295 : vector<8x32xf32>
    %297 = vector.extract_strided_slice %273 {offsets = [0, 8], sizes = [8, 8], strides = [1, 1]} : vector<8x32xf32> to vector<8x8xf32>
    %298 = vector.extract_strided_slice %274 {offsets = [0, 8], sizes = [8, 8], strides = [1, 1]} : vector<8x32xf32> to vector<8x8xf32>
    %299 = tpu.transpose %298, [1, 0] : vector<8x8xf32> -> vector<8x8xf32>
    %cst_115 = arith.constant dense<0.000000e+00> : vector<8x8xf32>
    %300 = tpu.matmul %297, %299, %cst_115 {dimension_numbers = #tpu.dot_dimension_numbers<[1], [0], [0], [1], [0, 0, 1, 1], [], []>} : vector<8x8xf32>, vector<8x8xf32>, vector<8x8xf32> -> vector<8x8xf32>
    %cst_116 = arith.constant dense<0xFF800000> : vector<8xf32>
    %301 = vector.multi_reduction <maximumf>, %300, %cst_116 [1] : vector<8x8xf32> to vector<8xf32>
    %302 = vector.shape_cast %301 : vector<8xf32> to vector<8x1xf32>
    %303 = vector.broadcast %302 : vector<8x1xf32> to vector<8x8xf32>
    %304 = arith.subf %300, %303 : vector<8x8xf32>
    %305 = math.exp %304 : vector<8x8xf32>
    %cst_117 = arith.constant dense<0.000000e+00> : vector<8xf32>
    %306 = vector.multi_reduction <add>, %305, %cst_117 [1] : vector<8x8xf32> to vector<8xf32>
    %307 = vector.shape_cast %306 : vector<8xf32> to vector<8x1xf32>
    %308 = tpu.reciprocal %307 {approx = true} : vector<8x1xf32> -> vector<8x1xf32>
    %309 = vector.broadcast %308 : vector<8x1xf32> to vector<8x8xf32>
    %310 = arith.mulf %305, %309 : vector<8x8xf32>
    %311 = vector.extract_strided_slice %275 {offsets = [0, 8], sizes = [8, 8], strides = [1, 1]} : vector<8x32xf32> to vector<8x8xf32>
    %cst_118 = arith.constant dense<0.000000e+00> : vector<8x8xf32>
    %312 = tpu.matmul %310, %311, %cst_118 {dimension_numbers = #tpu.dot_dimension_numbers<[1], [0], [0], [1], [0, 0, 1, 1], [], []>} : vector<8x8xf32>, vector<8x8xf32>, vector<8x8xf32> -> vector<8x8xf32>
    %c5_119 = arith.constant 5 : index
    %c0_120 = arith.constant 0 : index
    %c0_121 = arith.constant 0 : index
    %313 = vector.load %arg7[%c5_119, %c0_120, %c0_121] : memref<8x8x32xf32, #tpu.memory_space<vmem>>, vector<1x8x32xf32>
    %314 = vector.shape_cast %313 : vector<1x8x32xf32> to vector<8x32xf32>
    %cst_122 = arith.constant dense<0.000000e+00> : vector<8x32xf32>
    %315 = tpu.matmul %312, %314, %cst_122 {dimension_numbers = #tpu.dot_dimension_numbers<[1], [0], [0], [1], [0, 0, 1, 1], [], []>} : vector<8x8xf32>, vector<8x32xf32>, vector<8x32xf32> -> vector<8x32xf32>
    %316 = arith.addf %296, %315 : vector<8x32xf32>
    %317 = vector.extract_strided_slice %273 {offsets = [0, 16], sizes = [8, 8], strides = [1, 1]} : vector<8x32xf32> to vector<8x8xf32>
    %318 = vector.extract_strided_slice %274 {offsets = [0, 16], sizes = [8, 8], strides = [1, 1]} : vector<8x32xf32> to vector<8x8xf32>
    %319 = tpu.transpose %318, [1, 0] : vector<8x8xf32> -> vector<8x8xf32>
    %cst_123 = arith.constant dense<0.000000e+00> : vector<8x8xf32>
    %320 = tpu.matmul %317, %319, %cst_123 {dimension_numbers = #tpu.dot_dimension_numbers<[1], [0], [0], [1], [0, 0, 1, 1], [], []>} : vector<8x8xf32>, vector<8x8xf32>, vector<8x8xf32> -> vector<8x8xf32>
    %cst_124 = arith.constant dense<0xFF800000> : vector<8xf32>
    %321 = vector.multi_reduction <maximumf>, %320, %cst_124 [1] : vector<8x8xf32> to vector<8xf32>
    %322 = vector.shape_cast %321 : vector<8xf32> to vector<8x1xf32>
    %323 = vector.broadcast %322 : vector<8x1xf32> to vector<8x8xf32>
    %324 = arith.subf %320, %323 : vector<8x8xf32>
    %325 = math.exp %324 : vector<8x8xf32>
    %cst_125 = arith.constant dense<0.000000e+00> : vector<8xf32>
    %326 = vector.multi_reduction <add>, %325, %cst_125 [1] : vector<8x8xf32> to vector<8xf32>
    %327 = vector.shape_cast %326 : vector<8xf32> to vector<8x1xf32>
    %328 = tpu.reciprocal %327 {approx = true} : vector<8x1xf32> -> vector<8x1xf32>
    %329 = vector.broadcast %328 : vector<8x1xf32> to vector<8x8xf32>
    %330 = arith.mulf %325, %329 : vector<8x8xf32>
    %331 = vector.extract_strided_slice %275 {offsets = [0, 16], sizes = [8, 8], strides = [1, 1]} : vector<8x32xf32> to vector<8x8xf32>
    %cst_126 = arith.constant dense<0.000000e+00> : vector<8x8xf32>
    %332 = tpu.matmul %330, %331, %cst_126 {dimension_numbers = #tpu.dot_dimension_numbers<[1], [0], [0], [1], [0, 0, 1, 1], [], []>} : vector<8x8xf32>, vector<8x8xf32>, vector<8x8xf32> -> vector<8x8xf32>
    %c6_127 = arith.constant 6 : index
    %c0_128 = arith.constant 0 : index
    %c0_129 = arith.constant 0 : index
    %333 = vector.load %arg7[%c6_127, %c0_128, %c0_129] : memref<8x8x32xf32, #tpu.memory_space<vmem>>, vector<1x8x32xf32>
    %334 = vector.shape_cast %333 : vector<1x8x32xf32> to vector<8x32xf32>
    %cst_130 = arith.constant dense<0.000000e+00> : vector<8x32xf32>
    %335 = tpu.matmul %332, %334, %cst_130 {dimension_numbers = #tpu.dot_dimension_numbers<[1], [0], [0], [1], [0, 0, 1, 1], [], []>} : vector<8x8xf32>, vector<8x32xf32>, vector<8x32xf32> -> vector<8x32xf32>
    %336 = arith.addf %316, %335 : vector<8x32xf32>
    %337 = vector.extract_strided_slice %273 {offsets = [0, 24], sizes = [8, 8], strides = [1, 1]} : vector<8x32xf32> to vector<8x8xf32>
    %338 = vector.extract_strided_slice %274 {offsets = [0, 24], sizes = [8, 8], strides = [1, 1]} : vector<8x32xf32> to vector<8x8xf32>
    %339 = tpu.transpose %338, [1, 0] : vector<8x8xf32> -> vector<8x8xf32>
    %cst_131 = arith.constant dense<0.000000e+00> : vector<8x8xf32>
    %340 = tpu.matmul %337, %339, %cst_131 {dimension_numbers = #tpu.dot_dimension_numbers<[1], [0], [0], [1], [0, 0, 1, 1], [], []>} : vector<8x8xf32>, vector<8x8xf32>, vector<8x8xf32> -> vector<8x8xf32>
    %cst_132 = arith.constant dense<0xFF800000> : vector<8xf32>
    %341 = vector.multi_reduction <maximumf>, %340, %cst_132 [1] : vector<8x8xf32> to vector<8xf32>
    %342 = vector.shape_cast %341 : vector<8xf32> to vector<8x1xf32>
    %343 = vector.broadcast %342 : vector<8x1xf32> to vector<8x8xf32>
    %344 = arith.subf %340, %343 : vector<8x8xf32>
    %345 = math.exp %344 : vector<8x8xf32>
    %cst_133 = arith.constant dense<0.000000e+00> : vector<8xf32>
    %346 = vector.multi_reduction <add>, %345, %cst_133 [1] : vector<8x8xf32> to vector<8xf32>
    %347 = vector.shape_cast %346 : vector<8xf32> to vector<8x1xf32>
    %348 = tpu.reciprocal %347 {approx = true} : vector<8x1xf32> -> vector<8x1xf32>
    %349 = vector.broadcast %348 : vector<8x1xf32> to vector<8x8xf32>
    %350 = arith.mulf %345, %349 : vector<8x8xf32>
    %351 = vector.extract_strided_slice %275 {offsets = [0, 24], sizes = [8, 8], strides = [1, 1]} : vector<8x32xf32> to vector<8x8xf32>
    %cst_134 = arith.constant dense<0.000000e+00> : vector<8x8xf32>
    %352 = tpu.matmul %350, %351, %cst_134 {dimension_numbers = #tpu.dot_dimension_numbers<[1], [0], [0], [1], [0, 0, 1, 1], [], []>} : vector<8x8xf32>, vector<8x8xf32>, vector<8x8xf32> -> vector<8x8xf32>
    %c7_135 = arith.constant 7 : index
    %c0_136 = arith.constant 0 : index
    %c0_137 = arith.constant 0 : index
    %353 = vector.load %arg7[%c7_135, %c0_136, %c0_137] : memref<8x8x32xf32, #tpu.memory_space<vmem>>, vector<1x8x32xf32>
    %354 = vector.shape_cast %353 : vector<1x8x32xf32> to vector<8x32xf32>
    %cst_138 = arith.constant dense<0.000000e+00> : vector<8x32xf32>
    %355 = tpu.matmul %352, %354, %cst_138 {dimension_numbers = #tpu.dot_dimension_numbers<[1], [0], [0], [1], [0, 0, 1, 1], [], []>} : vector<8x8xf32>, vector<8x32xf32>, vector<8x32xf32> -> vector<8x32xf32>
    %356 = arith.addf %336, %355 : vector<8x32xf32>
    %357 = arith.addf %272, %356 : vector<8x32xf32>
    %358 = tpu.concatenate %188, %357 in 0 : vector<8x32xf32>, vector<8x32xf32> -> vector<16x32xf32>
    %359 = arith.addf %1, %358 : vector<16x32xf32>
    %c0_139 = arith.constant 0 : index
    %c0_140 = arith.constant 0 : index
    %360 = vector.load %arg8[%c0_139, %c0_140] : memref<1x32xf32, #tpu.memory_space<vmem>>, vector<1x32xf32>
    %361 = vector.broadcast %360 : vector<1x32xf32> to vector<16x32xf32>
    %362 = arith.addf %359, %361 : vector<16x32xf32>
    %c0_141 = arith.constant 0 : index
    %c0_142 = arith.constant 0 : index
    %363 = vector.load %arg13[%c0_141, %c0_142] : memref<1x32xf32, #tpu.memory_space<vmem>>, vector<1x32xf32>
    %c0_143 = arith.constant 0 : index
    %c0_144 = arith.constant 0 : index
    %364 = vector.load %arg14[%c0_143, %c0_144] : memref<1x32xf32, #tpu.memory_space<vmem>>, vector<1x32xf32>
    %cst_145 = arith.constant dense<0.000000e+00> : vector<16xf32>
    %365 = vector.multi_reduction <add>, %362, %cst_145 [1] : vector<16x32xf32> to vector<16xf32>
    %366 = vector.shape_cast %365 : vector<16xf32> to vector<16x1xf32>
    %cst_146 = arith.constant 3.200000e+01 : f32
    %367 = vector.broadcast %cst_146 : f32 to vector<16x1xf32>
    %368 = arith.divf %366, %367 : vector<16x1xf32>
    %369 = vector.broadcast %368 : vector<16x1xf32> to vector<16x32xf32>
    %370 = arith.subf %362, %369 : vector<16x32xf32>
    %371 = arith.mulf %370, %370 : vector<16x32xf32>
    %cst_147 = arith.constant dense<0.000000e+00> : vector<16xf32>
    %372 = vector.multi_reduction <add>, %371, %cst_147 [1] : vector<16x32xf32> to vector<16xf32>
    %373 = vector.shape_cast %372 : vector<16xf32> to vector<16x1xf32>
    %cst_148 = arith.constant 3.200000e+01 : f32
    %374 = vector.broadcast %cst_148 : f32 to vector<16x1xf32>
    %375 = arith.divf %373, %374 : vector<16x1xf32>
    %cst_149 = arith.constant 9.99999974E-6 : f32
    %376 = vector.broadcast %cst_149 : f32 to vector<16x1xf32>
    %377 = arith.addf %375, %376 : vector<16x1xf32>
    %378 = math.rsqrt %377 : vector<16x1xf32>
    %379 = vector.broadcast %378 : vector<16x1xf32> to vector<16x32xf32>
    %380 = arith.mulf %370, %379 : vector<16x32xf32>
    %381 = vector.broadcast %363 : vector<1x32xf32> to vector<16x32xf32>
    %382 = arith.mulf %380, %381 : vector<16x32xf32>
    %383 = vector.broadcast %364 : vector<1x32xf32> to vector<16x32xf32>
    %384 = arith.addf %382, %383 : vector<16x32xf32>
    %c0_150 = arith.constant 0 : index
    %c0_151 = arith.constant 0 : index
    %385 = vector.load %arg9[%c0_150, %c0_151] : memref<32x64xf32, #tpu.memory_space<vmem>>, vector<32x64xf32>
    %cst_152 = arith.constant dense<0.000000e+00> : vector<16x64xf32>
    %386 = tpu.matmul %384, %385, %cst_152 {dimension_numbers = #tpu.dot_dimension_numbers<[1], [0], [0], [1], [0, 0, 1, 1], [], []>} : vector<16x32xf32>, vector<32x64xf32>, vector<16x64xf32> -> vector<16x64xf32>
    %c0_153 = arith.constant 0 : index
    %c0_154 = arith.constant 0 : index
    %387 = vector.load %arg10[%c0_153, %c0_154] : memref<1x64xf32, #tpu.memory_space<vmem>>, vector<1x64xf32>
    %388 = vector.broadcast %387 : vector<1x64xf32> to vector<16x64xf32>
    %389 = arith.addf %386, %388 : vector<16x64xf32>
    %cst_155 = arith.constant 0.000000e+00 : f32
    %390 = vector.broadcast %cst_155 : f32 to vector<16x64xf32>
    %391 = arith.maximumf %389, %390 : vector<16x64xf32>
    %c0_156 = arith.constant 0 : index
    %c0_157 = arith.constant 0 : index
    %392 = vector.load %arg11[%c0_156, %c0_157] : memref<64x32xf32, #tpu.memory_space<vmem>>, vector<64x32xf32>
    %cst_158 = arith.constant dense<0.000000e+00> : vector<16x32xf32>
    %393 = tpu.matmul %391, %392, %cst_158 {dimension_numbers = #tpu.dot_dimension_numbers<[1], [0], [0], [1], [0, 0, 1, 1], [], []>} : vector<16x64xf32>, vector<64x32xf32>, vector<16x32xf32> -> vector<16x32xf32>
    %c0_159 = arith.constant 0 : index
    %c0_160 = arith.constant 0 : index
    %394 = vector.load %arg12[%c0_159, %c0_160] : memref<1x32xf32, #tpu.memory_space<vmem>>, vector<1x32xf32>
    %395 = vector.broadcast %394 : vector<1x32xf32> to vector<16x32xf32>
    %396 = arith.addf %393, %395 : vector<16x32xf32>
    %397 = arith.addf %384, %396 : vector<16x32xf32>
    %c0_161 = arith.constant 0 : index
    %c0_162 = arith.constant 0 : index
    %398 = vector.load %arg15[%c0_161, %c0_162] : memref<1x32xf32, #tpu.memory_space<vmem>>, vector<1x32xf32>
    %c0_163 = arith.constant 0 : index
    %c0_164 = arith.constant 0 : index
    %399 = vector.load %arg16[%c0_163, %c0_164] : memref<1x32xf32, #tpu.memory_space<vmem>>, vector<1x32xf32>
    %cst_165 = arith.constant dense<0.000000e+00> : vector<16xf32>
    %400 = vector.multi_reduction <add>, %397, %cst_165 [1] : vector<16x32xf32> to vector<16xf32>
    %401 = vector.shape_cast %400 : vector<16xf32> to vector<16x1xf32>
    %cst_166 = arith.constant 3.200000e+01 : f32
    %402 = vector.broadcast %cst_166 : f32 to vector<16x1xf32>
    %403 = arith.divf %401, %402 : vector<16x1xf32>
    %404 = vector.broadcast %403 : vector<16x1xf32> to vector<16x32xf32>
    %405 = arith.subf %397, %404 : vector<16x32xf32>
    %406 = arith.mulf %405, %405 : vector<16x32xf32>
    %cst_167 = arith.constant dense<0.000000e+00> : vector<16xf32>
    %407 = vector.multi_reduction <add>, %406, %cst_167 [1] : vector<16x32xf32> to vector<16xf32>
    %408 = vector.shape_cast %407 : vector<16xf32> to vector<16x1xf32>
    %cst_168 = arith.constant 3.200000e+01 : f32
    %409 = vector.broadcast %cst_168 : f32 to vector<16x1xf32>
    %410 = arith.divf %408, %409 : vector<16x1xf32>
    %cst_169 = arith.constant 9.99999974E-6 : f32
    %411 = vector.broadcast %cst_169 : f32 to vector<16x1xf32>
    %412 = arith.addf %410, %411 : vector<16x1xf32>
    %413 = math.rsqrt %412 : vector<16x1xf32>
    %414 = vector.broadcast %413 : vector<16x1xf32> to vector<16x32xf32>
    %415 = arith.mulf %405, %414 : vector<16x32xf32>
    %416 = vector.broadcast %398 : vector<1x32xf32> to vector<16x32xf32>
    %417 = arith.mulf %415, %416 : vector<16x32xf32>
    %418 = vector.broadcast %399 : vector<1x32xf32> to vector<16x32xf32>
    %419 = arith.addf %417, %418 : vector<16x32xf32>
    %420 = vector.shape_cast %419 : vector<16x32xf32> to vector<2x8x32xf32>
    %c0_170 = arith.constant 0 : index
    %c0_171 = arith.constant 0 : index
    %c0_172 = arith.constant 0 : index
    %421 = vector.load %arg17[%c0_170, %c0_171, %c0_172] : memref<2x8x32xf32, #tpu.memory_space<vmem>>, vector<2x8x32xf32>
    tpu.vector_store %arg17[%c0_170, %c0_171, %c0_172], %420 {strides = array<i32>} : memref<2x8x32xf32, #tpu.memory_space<vmem>>, vector<2x8x32xf32>,
    return
  }
  func.func @transform_0(%arg0: i32) -> (i32, i32, i32) {
    %c0_i32 = arith.constant 0 : i32
    %c0_i32_0 = arith.constant 0 : i32
    %c0_i32_1 = arith.constant 0 : i32
    return %arg0, %c0_i32, %c0_i32_0 : i32, i32, i32
  }
  func.func @transform_1(%arg0: i32) -> (i32, i32, i32) {
    %c0_i32 = arith.constant 0 : i32
    %c0_i32_0 = arith.constant 0 : i32
    %c0_i32_1 = arith.constant 0 : i32
    return %arg0, %c0_i32, %c0_i32_0 : i32, i32, i32
  }
  func.func @transform_2(%arg0: i32) -> (i32, i32) {
    %c0_i32 = arith.constant 0 : i32
    %c0_i32_0 = arith.constant 0 : i32
    %c0_i32_1 = arith.constant 0 : i32
    return %c0_i32, %c0_i32_0 : i32, i32
  }
  func.func @transform_3(%arg0: i32) -> (i32, i32) {
    %c0_i32 = arith.constant 0 : i32
    %c0_i32_0 = arith.constant 0 : i32
    %c0_i32_1 = arith.constant 0 : i32
    return %c0_i32, %c0_i32_0 : i32, i32
  }
  func.func @transform_4(%arg0: i32) -> (i32, i32) {
    %c0_i32 = arith.constant 0 : i32
    %c0_i32_0 = arith.constant 0 : i32
    %c0_i32_1 = arith.constant 0 : i32
    return %c0_i32, %c0_i32_0 : i32, i32
  }
  func.func @transform_5(%arg0: i32) -> (i32, i32) {
    %c0_i32 = arith.constant 0 : i32
    %c0_i32_0 = arith.constant 0 : i32
    %c0_i32_1 = arith.constant 0 : i32
    return %c0_i32, %c0_i32_0 : i32, i32
  }
  func.func @transform_6(%arg0: i32) -> (i32, i32, i32) {
    %c0_i32 = arith.constant 0 : i32
    %c0_i32_0 = arith.constant 0 : i32
    %c0_i32_1 = arith.constant 0 : i32
    %c0_i32_2 = arith.constant 0 : i32
    return %c0_i32, %c0_i32_0, %c0_i32_1 : i32, i32, i32
  }
  func.func @transform_7(%arg0: i32) -> (i32, i32) {
    %c0_i32 = arith.constant 0 : i32
    %c0_i32_0 = arith.constant 0 : i32
    %c0_i32_1 = arith.constant 0 : i32
    return %c0_i32, %c0_i32_0 : i32, i32
  }
  func.func @transform_8(%arg0: i32) -> (i32, i32) {
    %c0_i32 = arith.constant 0 : i32
    %c0_i32_0 = arith.constant 0 : i32
    %c0_i32_1 = arith.constant 0 : i32
    return %c0_i32, %c0_i32_0 : i32, i32
  }
  func.func @transform_9(%arg0: i32) -> (i32, i32) {
    %c0_i32 = arith.constant 0 : i32
    %c0_i32_0 = arith.constant 0 : i32
    %c0_i32_1 = arith.constant 0 : i32
    return %c0_i32, %c0_i32_0 : i32, i32
  }
  func.func @transform_10(%arg0: i32) -> (i32, i32) {
    %c0_i32 = arith.constant 0 : i32
    %c0_i32_0 = arith.constant 0 : i32
    %c0_i32_1 = arith.constant 0 : i32
    return %c0_i32, %c0_i32_0 : i32, i32
  }
  func.func @transform_11(%arg0: i32) -> (i32, i32) {
    %c0_i32 = arith.constant 0 : i32
    %c0_i32_0 = arith.constant 0 : i32
    %c0_i32_1 = arith.constant 0 : i32
    return %c0_i32, %c0_i32_0 : i32, i32
  }
  func.func @transform_12(%arg0: i32) -> (i32, i32) {
    %c0_i32 = arith.constant 0 : i32
    %c0_i32_0 = arith.constant 0 : i32
    %c0_i32_1 = arith.constant 0 : i32
    return %c0_i32, %c0_i32_0 : i32, i32
  }
  func.func @transform_13(%arg0: i32) -> (i32, i32) {
    %c0_i32 = arith.constant 0 : i32
    %c0_i32_0 = arith.constant 0 : i32
    %c0_i32_1 = arith.constant 0 : i32
    return %c0_i32, %c0_i32_0 : i32, i32
  }
  func.func @transform_14(%arg0: i32) -> (i32, i32) {
    %c0_i32 = arith.constant 0 : i32
    %c0_i32_0 = arith.constant 0 : i32
    %c0_i32_1 = arith.constant 0 : i32
    return %c0_i32, %c0_i32_0 : i32, i32
  }
  func.func @transform_15(%arg0: i32) -> (i32, i32) {
    %c0_i32 = arith.constant 0 : i32
    %c0_i32_0 = arith.constant 0 : i32
    %c0_i32_1 = arith.constant 0 : i32
    return %c0_i32, %c0_i32_0 : i32, i32
  }
  func.func @transform_16(%arg0: i32) -> (i32, i32, i32) {
    %c0_i32 = arith.constant 0 : i32
    %c0_i32_0 = arith.constant 0 : i32
    %c0_i32_1 = arith.constant 0 : i32
    return %arg0, %c0_i32, %c0_i32_0 : i32, i32, i32
  }
}

</mosaic_0001>

<bundles_post_ra>
// kernel: tpu_custom_call.1
= control target key start
LH: loop header
LB: loop body
LE: loop exit
PB: predicated region body
PF: predicated region fallthrough
CT: control target
= control target key end

     0   :  { %s6749_s0 = inlined_call_operand.vmem [shape: f32[4,8,32], index: 0, kind: input, shape index: {}]   ;;  %s6750_s1 = inlined_call_operand.hbm [shape: f32[4,8,32], index: 1, kind: input, shape index: {}]   ;;  %s6751_s2 = inlined_call_operand.hbm [shape: f32[32,128], index: 2, kind: input, shape index: {}]   ;;  %s6752_s3 = inlined_call_operand.vmem [shape: f32[1,128], index: 3, kind: input, shape index: {}]   ;;  %s6753_s4 = inlined_call_operand.hbm [shape: f32[32,64], index: 4, kind: input, shape index: {}]   ;;  %s6754_s5 = inlined_call_operand.vmem [shape: f32[1,64], index: 5, kind: input, shape index: {}]   ;;  %s6755_s6 = inlined_call_operand.vmem [shape: f32[8,8,32], index: 6, kind: input, shape index: {}]   ;;  %s6756_s7 = inlined_call_operand.vmem [shape: f32[1,32], index: 7, kind: input, shape index: {}]   ;;  %s6757_s8 = inlined_call_operand.hbm [shape: f32[32,64], index: 8, kind: input, shape index: {}]   ;;  %s6758_s9 = inlined_call_operand.vmem [shape: f32[1,64], index: 9, kind: input, shape index: {}]   ;;  %s6759_s10 = inlined_call_operand.vmem [shape: f32[64,32], index: 10, kind: input, shape index: {}]   ;;  %s6760_s11 = inlined_call_operand.vmem [shape: f32[1,32], index: 11, kind: input, shape index: {}]   ;;  %s6761_s12 = inlined_call_operand.vmem [shape: f32[1,32], index: 12, kind: input, shape index: {}]   ;;  %s6762_s13 = inlined_call_operand.vmem [shape: f32[1,32], index: 13, kind: input, shape index: {}]   ;;  %s6763_s14 = inlined_call_operand.vmem [shape: f32[1,32], index: 14, kind: input, shape index: {}]   ;;  %s6764_s15 = inlined_call_operand.vmem [shape: f32[1,32], index: 15, kind: input, shape index: {}]   ;;  %s6765_s16 = inlined_call_operand.hbm [shape: f32[4,8,32], index: 16, kind: output, shape index: {}]  }
   0x1   :  { %6781 = sst [smem:[#allocation19_spill]] %s6749_s0 }
   0x2   :  { %6782 = sst [smem:[#allocation20_spill]] %s6751_s2 }
   0x3   :  { %6783 = sst [smem:[#allocation21_spill]] %s6753_s4 }
   0x4   :  { %6784 = sst [smem:[#allocation22_spill]] %s6757_s8 }
   0x5   :  { %6785 = sst [smem:[#allocation23_spill]] %s6764_s15 }
   0x6   :  { %6786 = sst [smem:[#allocation24_spill]] %s6765_s16 }
   0x7   :  { %21 = vsyncpa [#allocation3], 0 }
   0x8   :  { %23 = vsyncpa [#allocation3 + $0x1], 0 }
   0x9   :  { %24 = vsyncpa [#allocation6], 0 }
   0xa   :  { %25 = vsyncpa [#allocation9], 0 }
   0xb   :  { %26 = vsyncpa [#allocation4], 0 }
   0xc   :  { %28 = vsyncpa [#allocation4 + $0x1], 0  ;;  %s6039_s21 = smov 0   ;;  %s6041_s22 = smov 0  }
   0xd   :  { %s6043_s23 = smov 0   ;;  %s6045_s24 = smov 0  }
   0xe LB: > { %6787 = sst [smem:[#allocation15_spill]] %s5915_s21  ;;  %s6060_s25 = sadd.s32 4294967295, %s5927_s24   ;;  %s5927_s24 = sphi %s6045_s24, %s6825_s24   ;;  %s5923_s23 = sphi %s6043_s23, %s6822_s23   ;;  %s5919_s22 = sphi %s6041_s22, %s6824_s22   ;;  %s5915_s21 = sphi %s6039_s21, %s6823_s21  }
   0xf   : > { %6788 = sst [smem:[#allocation16_spill]] %s5923_s23  ;;  %s5050_s26 = sadd.s32 4294967294, %s5927_s24  }
  0x10   : > { %p80_p0 = scmp.ne.s32.totalorder %s5919_s22, %s5915_s21  ;;  %p6769_p1 = scmp.eq.s32.totalorder %s6060_s25, 0 }
  0x11   : > { %p398_p2 = scmp.eq.s32.totalorder %s6060_s25, 1  ;;  %p404_p3 = scmp.eq.s32.totalorder %s5050_s26, 1 }
  0x12   : > { %p6069_p4 = por %p6769_p1, %p80_p0  ;;  %p5051_p5 = scmp.ge.s32.totalorder %s5927_s24, 1 }
  0x13   : > { %p6074_p6 = por %p404_p3, %p80_p0  ;;  %p411_p7 = scmp.lt.s32.totalorder %s5927_s24, 3 }
  0x14   : > { %s6789_s27 = scalar_select %p6069_p4, 1, 0 }
  0x15   : > { %s6790_s28 = scalar_select %p6074_p6, 1, 0 }
  0x16   : > { %p6079_p8 = pnand %p5051_p5, %p411_p7  ;;  %s5929_s30 = smov [#allocation5]  }
  0x17   : > { %6791 = sst [smem:[#allocation17_spill]] %s6790_s28  ;;  %s423_s0 = sshll.u32 %s5929_s30, 4  ;;  %s424_s0 = int_to_ptr.vmem [resolvable:$true] %s423_s0 }
  0x18   : > { %s6792_s29 = scalar_select %p6079_p8, 1, 0 }
  0x19   : > { %p5594_p9 = pneg %p6079_p8  ;;  %s5930_s18 = smov [#allocation7]  }
  0x1a   : > { %s439_s19 = sshll.u32 %s5930_s18, 4  ;;  %s5931_s20 = smov [#allocation8]   ;;  %s440_s19 = int_to_ptr.vmem [resolvable:$true] %s439_s19 }
  0x1b   : > { %p6088_p11 = pnand %p5594_p9, %p6769_p1  ;;  %s461_s26 = sshll.u32 %s5931_s20, 4  ;;  %s462_s26 = int_to_ptr.vmem [resolvable:$true] %s461_s26 }
  0x1c   : > { %s5760_s28 = scalar_lea.vmem %s424_s0, 512  ;;  %p5768_p5 = scmp.lt.s32.totalorder %s424_s0, %s424_s0 }
  0x1d   : > { %p5751_p12 = pneg %p6088_p11  ;;  %p5761_p13 = scmp.ne.s32.totalorder %s424_s0, %s5760_s28 }
  0x1e   : > { %p5769_p7 = scmp.lt.s32.totalorder %s5760_s28, %s5760_s28 }
  0x1f   : > { %p5763_p0 = pnand %p5761_p13, %p5751_p12 }
  0x20   : > { %p5770_p9 = por %p5769_p7, %p5768_p5 }
  0x21   : > { %p5764_p3 = pneg %p5763_p0 }
  0x23   : > { %p5771_p10 = pnand %p5770_p9, %p5764_p3 }
  0x25   : > { %5774 = shalt.err (!%p5771_p10)
}
  0x26   : > { %s6770_s30 = smov 128   ;;  %s6771_s18 = smov 8  }
  0x27   : > { %s6794_s2 = sld [smem:[#allocation20_spill]]  ;;  %s5786_s16 = scalar_lea.vmem %s440_s19, 512 }
  0x28   : > { %p5787_p13 = scmp.ne.s32.totalorder %s440_s19, %s5786_s16  ;;  %p5794_p3 = scmp.lt.s32.totalorder %s440_s19, %s440_s19 }
  0x29   : > { %p5795_p10 = scmp.lt.s32.totalorder %s5786_s16, %s5786_s16 }
  0x2a   : > { %p5789_p0 = pnand %p5787_p13, %p5751_p12 }
  0x2b   : > { %p5796_p7 = por %p5795_p10, %p5794_p3 }
  0x2c   : > { %p5790_p5 = pneg %p5789_p0 }
  0x2d   : > { %5597 = dma.hbm_to_vmem [thread:$0]  (!%p6088_p11), %s6794_s2, 512, %s424_s0, [#allocation6], %s6770_s30, %s6770_s30, %s6771_s18  }
  0x2e   : > { %p5797_p9 = pnand %p5796_p7, %p5790_p5 }
  0x30   : > { %5800 = shalt.err (!%p5797_p9)
}
  0x31   : > { %s6795_s4 = sld [smem:[#allocation21_spill]]  ;;  %s5812_s21 = scalar_lea.vmem %s462_s26, 512 }
  0x32   : > { %p5813_p1 = scmp.ne.s32.totalorder %s462_s26, %s5812_s21  ;;  %p5820_p3 = scmp.lt.s32.totalorder %s462_s26, %s462_s26 }
  0x33   : > { %p5821_p5 = scmp.lt.s32.totalorder %s5812_s21, %s5812_s21 }
  0x34   : > { %p5815_p13 = pnand %p5813_p1, %p5751_p12 }
  0x35   : > { %p5822_p10 = por %p5821_p5, %p5820_p3 }
  0x36   : > { %p5816_p0 = pneg %p5815_p13 }
  0x37   : > { %5600 = dma.hbm_to_vmem [thread:$0]  (!%p6088_p11), %s6795_s4, 512, %s440_s19, [#allocation6], %s6770_s30, %s6770_s30, %s6771_s18  }
  0x38   : > { %p5823_p7 = pnand %p5822_p10, %p5816_p0 }
  0x3a   : > { %5826 = shalt.err (!%p5823_p7)
}
  0x3b   : > { %s6796_s8 = sld [smem:[#allocation22_spill]]  ;;  %s6128_s0 = sadd.s32 1, %s5927_s24  }
  0x3c   : > { %s64_s17 = ssub.s32 %s5927_s24, %s6128_s0  ;;  %s67_s19 = sadd.s32 1, %s5923_s23 }
  0x3d   : > { %p65_p1 = scmp.eq.s32.totalorder %s64_s17, 0  ;;  %p74_p12 = scmp.ne.s32.totalorder %s5923_s23, %s5919_s22 }
  0x3e   : > { %p75_p9 = scmp.eq.s32.totalorder %s5927_s24, 0  ;;  %p5615_p13 = scmp.lt.s32.totalorder %s5927_s24, 2 }
  0x3f   : > { %s6138_s20 = scalar_select %p65_p1, %s5923_s23, %s67_s19  }
  0x40   : > { %p76_p0 = por %p75_p9, %p74_p12  ;;  %p6142_p3 = por %p398_p2, %p74_p12 }
  0x41   : > { %5603 = dma.hbm_to_vmem [thread:$0]  (!%p6088_p11), %s6796_s8, 512, %s462_s26, [#allocation9], %s6770_s30, %s6770_s30, %s6771_s18  }
  0x42   : > { %6797 = sst [smem:[#allocation18_spill]] %s6138_s20  ;;  %s505_s21 = sand.u32 1, %s5923_s23  }
  0x43   : > { %s6798_s28 = scalar_select %p6142_p3, 1, 0 }
  0x44   : > { %s5160_s15 = sshll.u32 %s5927_s24, 8  ;;  %s5056_s26 = sshll.u32 %s505_s21, 4 }
  0x45   : > { %s6151_s18 = scalar_lea.hbm %s6750_s1, %s5160_s15  ;;  %s509_s17 = scalar_lea.vmem [#allocation2], %s5056_s26 }
  0x46   : > { %s516_s19 = sshll.u32 %s509_s17, 4  ;;  %p6153_p11 = pnand %p5615_p13, %p76_p0  ;;  %s6157_s19 = int_to_ptr.vmem [resolvable:$true] %s516_s19 }
  0x47   : > { %s6159_s4 = scalar_lea.sflag [#allocation3], %s505_s21  ;;  %s5827_s8 = scalar_lea.hbm %s6151_s18, 256 }
  0x48   : > { %p5828_p2 = scmp.ne.s32.totalorder %s6151_s18, %s5827_s8  ;;  %p5829_p5 = pneg %p6153_p11 }
  0x49   : > { %s5832_s26 = scalar_lea.hbm %s6750_s1, 512  ;;  %p5833_p1 = scmp.lt.s32.totalorder %s6151_s18, %s6750_s1 }
  0x4a   : > { %p5830_p10 = pnand %p5829_p5, %p5828_p2  ;;  %p5834_p12 = scmp.lt.s32.totalorder %s5832_s26, %s5827_s8 }
  0x4c   : > { %p5831_p7 = pneg %p5830_p10  ;;  %p5835_p9 = por %p5834_p12, %p5833_p1 }
  0x4e   : > { %p5836_p13 = pnand %p5835_p9, %p5831_p7 }
  0x50   : > { %5839 = shalt.err (!%p5836_p13)
}
  0x51   : > { %s5840_s21 = scalar_lea.vmem %s6157_s19, 256  ;;  %s5934_s20 = smov [#allocation2]  }
  0x52   : > { %p5841_p0 = scmp.ne.s32.totalorder %s6157_s19, %s5840_s21  ;;  %s5845_s23 = sshll.u32 %s5934_s20, 4  ;;  %s5846_s23 = int_to_ptr.vmem [resolvable:$false] %s5845_s23 }
  0x53   : > { %s5847_s30 = scalar_lea.vmem %s5846_s23, 512  ;;  %p5848_p10 = scmp.lt.s32.totalorder %s6157_s19, %s5846_s23 }
  0x54   : > { %p5843_p6 = pnand %p5841_p0, %p5829_p5  ;;  %p5849_p3 = scmp.lt.s32.totalorder %s5847_s30, %s5840_s21 }
  0x56   : > { %p5844_p2 = pneg %p5843_p6  ;;  %p5850_p4 = por %p5849_p3, %p5848_p10 }
  0x58   : > { %p5851_p8 = pnand %p5850_p4, %p5844_p2 }
  0x5a   : > { %5854 = shalt.err (!%p5851_p8)
}
  0x5b   : > { %s6800_s8 = smov 8   ;;  %s6801_s15 = smov 128  }
  0x5c   : > { %5607 = dma.hbm_to_vmem [thread:$0]  (!%p6153_p11), %s6151_s18, 256, %s6157_s19, %s6159_s4, %s6801_s15, %s6801_s15, %s6800_s8  }
  0x5d   : > { %p6802_p6 = scmp.ne.s32.totalorder %s6792_s29, 0 }
  0x5e   : > { %s6186_s20 = sand.u32 (!%p6802_p6), 1, %s5919_s22   ;;  %p6803_p4 = scmp.ne.s32.totalorder (!%p6802_p6), %s6789_s27, 0 }
  0x5f   : > { %528 = sbr.rel (%p6802_p6) target bundleno = 9141 (0x23b5), region = 84  ;;  %s6776_s23 = sshll.u32 (!%p6802_p6), %s6186_s20, 4 }
  0x60   : > { %s531_s26 = scalar_lea.sflag (!%p6802_p6), [#allocation3], %s6186_s20  ;;  %s6192_s2 = scalar_lea.vmem (!%p6802_p6), [#allocation2], %s6776_s23 }
  0x64   : > { %5898 = dma.done.wait (%p6803_p4), %s531_s26, 256  }
  0x65   : > { %5900 = vsyncadd (%p6803_p4), %s531_s26, 4294967040  ;;  %p6804_p8 = scmp.eq.s32.totalorder %s6060_s25, 0 }
  0x67   : > { %5902 = dma.done.wait (%p6804_p8), [#allocation6], 1024   ;;  %p6805_p3 = pmov %p6804_p8 }
  0x69   : > { %5904 = vsyncadd (%p6805_p3), [#allocation6], 4294966272  ;;  %p6806_p11 = pmov %p6805_p3 }
  0x6a   : > { %p6807_p5 = pmov %p6805_p3 }
  0x6b   : > { %5906 = dma.done.wait (%p6806_p11), [#allocation9], 512  }
  0x6c   : > { %5908 = vsyncadd (%p6807_p5), [#allocation9], 4294966784  ;;  %s5065_s4 = sshll.u32 %s6060_s25, 1  ;;  %v708_v0 = vld [vmem:[#allocation7 + $0x18] sm:$0xff]  ;;  %v707_v2 = vld [vmem:[#allocation7 + $0x10] sm:$0xff]  ;;  %vm623_vm0 = vcmask 261120  }
  0x6d   : > { %p601_p7 = scmp.lt.s32.totalorder %s5065_s4, 3  ;;  %v615_v1 = vld [vmem:[#allocation5 + $0x18] sm:$0xff]  ;;  %5297 = vmatprep.subr.mxu1 %v708_v0  ;;  %v614_v3 = vld [vmem:[#allocation5 + $0x10] sm:$0xff]  ;;  %v706_v4 = vld [vmem:[#allocation7 + $0x8] sm:$0xff]  ;;  %s6808_s19 = sld [smem:[#allocation19_spill]]  ;;  %v5935_v12 = vmov 0.0  }
  0x6e   : > { %5286 = vmatprep.subr.mxu0 %v615_v1  ;;  %5298 = vmatpush3.msra.mxu1 %v708_v0  ;;  %v613_v5 = vld [vmem:[#allocation5 + $0x8] sm:$0xff]  ;;  %v705_v6 = vld [vmem:[#allocation7] sm:$0xff]  ;;  %vm5936_vm1 = vmmov 0   ;;  %vm797_vm2 = vcmask 64512   ;;  %s5937_s15 = smov 96   ;;  %s5938_s26 = smov 120  }
  0x6f   : > { %s6827_s4 = smov (!%p601_p7, %s5065_s4), 3  ;;  %5287 = vmatpush3.msra.mxu0 %v615_v1  ;;  %5299 = vmatprep.subr.mxu1 %v707_v2  ;;  %v610_v7 = vld [vmem:[%s6192_s2] sm:$0xff]  ;;  %v611_v9 = vld [vmem:[%s6192_s2 + $0x8] sm:$0xff]  ;;  %s5939_s2 = smov 88   ;;  %vm4792_vm3 = vcmask 523264  }
  0x70   : > { %s5066_s27 = sshll.u32 %s6827_s4, 3  ;;  %5288 = vmatprep.subr.mxu0 %v614_v3  ;;  %5300 = vmatpush3.msra.mxu1 %v707_v2  ;;  %v612_v8 = vld [vmem:[#allocation5] sm:$0xff]  ;;  %s5940_s4 = smov 112   ;;  %v6276_v48 = vld [vmem:[%s6755_s6 + $0x8] sm:$0xff] }
  0x71   : > { %5289 = vmatpush3.msra.mxu0 %v614_v3  ;;  %5301 = vmatprep.subr.mxu1 %v706_v4  ;;  %v5070_v13 = vld [vmem:[%s6754_s5] ss:$0 sm:$0xff]  ;;  %s5941_s17 = smov 80   ;;  %s5942_s21 = smov 104  }
  0x72   : > { %5290 = vmatprep.subr.mxu0 %v613_v5  ;;  %5302 = vmatpush3.msra.mxu1 %v706_v4  ;;  %v5067_v15 = vld [vmem:[%s6752_s3] ss:$0 sm:$0xff]  ;;  %s5944_s29 = smov 56   ;;  %s5945_s18 = smov 64  }
  0x73   : > { %s6211_s16 = scalar_lea.vmem %s6808_s19, %s5066_s27  ;;  %5291 = vmatpush3.msra.mxu0 %v613_v5  ;;  %5303 = vmatprep.subr.mxu1 %v705_v6  ;;  %v6283_v52 = vld [vmem:[%s6755_s6] sm:$0xff]  ;;  %s5943_s27 = smov 72  }
  0x74   : > { %5305 = vmatprep.mubr.msk.f32.mxu1 %vm623_vm0, %v610_v7  ;;  %v608_v10 = vld [vmem:[%s6211_s16] sm:$0xff]  ;;  %5304 = vmatpush3.msra.mxu1 %v705_v6  ;;  %v609_v11 = vld [vmem:[%s6211_s16 + $0x8] sm:$0xff]  ;;  %s6779_s8 = smov 24   ;;  %s6778_s19 = smov 32  }
  0x75   : > { %5292 = vmatprep.subr.mxu0 %v612_v8  ;;  %5306 = vmatmul.mubr.msk.f32.vlgmr.msra.gmra.mxu1 %vm623_vm0, %v611_v9  ;;  %s6777_s30 = smov 48   ;;  %s5949_s23 = smov 40  }
  0x76   : > { %5293 = vmatpush3.msra.mxu0 %v612_v8  ;;  %5294 = vmatprep.mubr.msk.f32.mxu0 %vm623_vm0, %v608_v10  ;;  %p6816_p12 = scmp.ne.s32.totalorder %s6798_s28, 0 }
  0x77   : > { %5295 = vmatmul.mubr.msk.f32.vlgmr.msra.gmra.mxu0 %vm623_vm0, %v609_v11  ;;  %5308 = vmatprep.subr.mxu0 %v5935_v12  ;;  %v6323_v11 = vld [vmem:[%s6755_s6 + $0x10] sm:$0xff] }
  0x78   : > { %5323 = vmatprep.subr.mxu1 %v5935_v12  ;;  %5310 = vmatprep.mubr.msk.f32.mxu0 %vm5936_vm1, %v5935_v12 }
  0x79   : > { %5325 = vmatprep.mubr.msk.f32.mxu1 %vm5936_vm1, %v5935_v12 }
 0x135   : > { %v5307_v14 = vpop.f32.mrf.mxu1 }
 0x136   : > { %v6232_v16 = vadd.f32 %v5307_v14, %v5070_v13 }
 0x137   : > { %v5296_v17 = vpop.f32.mrf.mxu0  ;;  %v788_v18 = vpop.f32.mrf.mxu1 }
 0x138   : > { %v6234_v19 = vadd.f32 %v5296_v17, %v5067_v15  ;;  %v6236_v20 = vadd.f32 %v5070_v13, %v788_v18 }
 0x139   : > { %v696_v21 = vpop.f32.mrf.mxu0 }
 0x13a   : > { %885 = vrot.lane.b32.xlu1 %v6236_v20, %s5937_s15  ;;  %5309 = vmatpush3.xpose.msk.msra.mxu0 %vm797_vm2, %v6236_v20  ;;  %v6242_v22 = vadd.f32 %v5067_v15, %v696_v21 }
 0x13b   : > { %5313 = vmatprep.subr.mxu0 %v5935_v12 }
 0x13d   : > { %5311 = vmatmul.mubr.msk.f32.vlgmr.msra.gmra.mxu0 %vm797_vm2, %v6242_v22 }
 0x13e   : > { %964 = vrot.lane.b32.xlu1 %v6236_v20, %s5938_s26  ;;  %5315 = vmatprep.mubr.msk.f32.mxu0 %vm5936_vm1, %v5935_v12 }
 0x1ac   : > { %v886_v23 = vpop.permute.xlu1 %885 }
 0x1ad   : > { %5314 = vmatpush3.msra.mxu0 %v886_v23 }
 0x1ae   : > { %5318 = vmatprep.subr.mxu0 %v5935_v12 }
 0x1b0   : > { %v965_v35 = vpop.permute.xlu1 %964 }
 0x1fd   : > { %v870_v24 = vpop.f32.mrf.mxu0 }
 0x1fe   : > { %v874_v25 = vsel %vm797_vm2, %v870_v24, -inf }
 0x1ff   : > { %875 = vmax.xlane.f32.xlu0 %v874_v25  ;;  %v5312_v26 = vpop.f32.mrf.mxu0 }
 0x288   : > { %v876_v27 = vpop.xlane.xlu0 %875 }
 0x289   : > { %v877_v28 = vsub.f32 %v870_v24, %v876_v27 }
 0x28b   : > { %v878_v29 = vmul.f32 1.442695, %v877_v28 }
 0x28d   : > { %5675 = vpow2.f32 %v878_v29 }
 0x29a   : > { %v5676_v30 = vpop.eup %5675 }
 0x29b   : > { %v880_v31 = vsel %vm797_vm2, %v5676_v30, 0.0 }
 0x29c   : > { %881 = vadd.xlane.f32.xlu0 %v880_v31 }
 0x2b2   : > { %962 = vrot.lane.b32.xlu0 %v6242_v22, %s5938_s26 }
 0x325   : > { %v882_v32 = vpop.xlane.xlu0 %881 }
 0x326   : > { %5677 = vrcp.f32 %v882_v32 }
 0x329   : > { %v963_v36 = vpop.permute.xlu0 %962 }
 0x333   : > { %v5678_v33 = vpop.eup %5677 }
 0x334   : > { %v884_v34 = vmul.f32 %v5678_v33, %v5676_v30 }
 0x336   : > { %5316 = vmatmul.mubr.msk.f32.vlgmr.msra.gmra.mxu0 %vm797_vm2, %v884_v34 }
 0x337   : > { %5319 = vmatpush3.xpose.msk.msra.mxu0 %vm797_vm2, %v965_v35  ;;  %5320 = vmatprep.mubr.msk.f32.mxu0 %vm5936_vm1, %v5935_v12 }
 0x338   : > { %5328 = vmatprep.subr.mxu0 %v5935_v12 }
 0x33a   : > { %5321 = vmatmul.mubr.msk.f32.vlgmr.msra.gmra.mxu0 %vm797_vm2, %v963_v36 }
 0x33b   : > { %5330 = vmatprep.mubr.msk.f32.mxu0 %vm5936_vm1, %v5935_v12  ;;  %5329 = vmatpush3.msra.mxu0 %v6276_v48 }
 0x33c   : > { %5338 = vmatprep.subr.mxu0 %v5935_v12 }
 0x3f6   : > { %v957_v37 = vpop.f32.mrf.mxu0 }
 0x3f8   : > { %v5317_v38 = vpop.f32.mrf.mxu0 }
 0x3f9   : > { %v6360_v38 = vld [vmem:[%s6755_s6 + $0x18] sm:$0xff] }
 0x3fa   : > { %v1036_v39 = vpop.f32.mrf.mxu0 }
 0x3fb   : > { %v1040_v40 = vsel %vm797_vm2, %v1036_v39, -inf }
 0x3fc   : > { %1041 = vmax.xlane.f32.xlu1 %v1040_v40  ;;  %v5322_v41 = vpop.f32.mrf.mxu0 }
 0x40d   : > { %1051 = vrot.lane.b32.xlu1 %v6236_v20, %s5939_s2 }
 0x411   : > { %1275 = vrot.lane.b32.xlu1 %v6242_v22, %s5940_s4 }
 0x485   : > { %v1042_v42 = vpop.xlane.xlu1 %1041 }
 0x486   : > { %v1043_v43 = vsub.f32 %v1036_v39, %v1042_v42 }
 0x488   : > { %v1044_v44 = vmul.f32 1.442695, %v1043_v43 }
 0x489   : > { %v1052_v45 = vpop.permute.xlu1 %1051 }
 0x48a   : > { %5679 = vpow2.f32 %v1044_v44  ;;  %5324 = vmatpush3.msra.mxu1 %v1052_v45 }
 0x48b   : > { %5333 = vmatprep.subr.mxu1 %v5935_v12 }
 0x48d   : > { %v1276_v56 = vpop.permute.xlu1 %1275 }
 0x497   : > { %v5680_v46 = vpop.eup %5679 }
 0x498   : > { %v1046_v47 = vsel %vm797_vm2, %v5680_v46, 0.0 }
 0x499   : > { %1047 = vadd.xlane.f32.xlu0 %v1046_v47 }
 0x4af   : > { %1277 = vrot.lane.b32.xlu0 %v6236_v20, %s5940_s4 }
 0x522   : > { %v1048_v49 = vpop.xlane.xlu0 %1047 }
 0x523   : > { %5681 = vrcp.f32 %v1048_v49 }
 0x526   : > { %v1278_v54 = vpop.permute.xlu0 %1277 }
 0x530   : > { %v5682_v50 = vpop.eup %5681 }
 0x531   : > { %v1050_v51 = vmul.f32 %v5682_v50, %v5680_v46 }
 0x533   : > { %5326 = vmatmul.mubr.msk.f32.vlgmr.msra.gmra.mxu1 %vm797_vm2, %v1050_v51 }
 0x534   : > { %5334 = vmatpush3.msra.mxu1 %v6283_v52  ;;  %5335 = vmatprep.mubr.msk.f32.mxu1 %vm5936_vm1, %v5935_v12 }
 0x535   : > { %5343 = vmatprep.subr.mxu1 %v5935_v12 }
 0x537   : > { %5336 = vmatmul.mubr.msk.f32.vlgmr.msra.gmra.mxu1 %vm797_vm2, %v957_v37 }
 0x538   : > { %5345 = vmatprep.mubr.msk.f32.mxu1 %vm5936_vm1, %v5935_v12 }
 0x5f3   : > { %v1123_v53 = vpop.f32.mrf.mxu1 }
 0x5f4   : > { %5331 = vmatmul.mubr.msk.f32.vlgmr.msra.gmra.mxu0 %vm797_vm2, %v1123_v53 }
 0x5f5   : > { %5339 = vmatpush3.xpose.msk.msra.mxu0 %vm797_vm2, %v1278_v54  ;;  %v5327_v55 = vpop.f32.mrf.mxu1  ;;  %5340 = vmatprep.mubr.msk.f32.mxu0 %vm5936_vm1, %v5935_v12 }
 0x5f6   : > { %5348 = vmatprep.subr.mxu0 %v5935_v12 }
 0x5f7   : > { %v6298_v57 = vpop.f32.mrf.mxu1 }
 0x5f8   : > { %5341 = vmatmul.mubr.msk.f32.vlgmr.msra.gmra.mxu0 %vm797_vm2, %v1276_v56 }
 0x5f9   : > { %v5337_v58 = vpop.f32.mrf.mxu1  ;;  %5350 = vmatprep.mubr.msk.f32.mxu0 %vm5936_vm1, %v5935_v12  ;;  %5349 = vmatpush3.msra.mxu0 %v6323_v11 }
 0x5fa   : > { %5358 = vmatprep.subr.mxu0 %v5935_v12 }
 0x6b4   : > { %v1198_v59 = vpop.f32.mrf.mxu0 }
 0x6b5   : > { %v1272_v27 = vadd.f32 %v6298_v57, %v1198_v59 }
 0x6b6   : > { %v5332_v60 = vpop.f32.mrf.mxu0 }
 0x6b8   : > { %v1349_v61 = vpop.f32.mrf.mxu0 }
 0x6b9   : > { %v1353_v62 = vsel %vm797_vm2, %v1349_v61, -inf }
 0x6ba   : > { %1354 = vmax.xlane.f32.xlu1 %v1353_v62  ;;  %v5342_v63 = vpop.f32.mrf.mxu0 }
 0x6cb   : > { %1364 = vrot.lane.b32.xlu1 %v6236_v20, %s5941_s17 }
 0x6cf   : > { %1516 = vrot.lane.b32.xlu1 %v6242_v22, %s5942_s21 }
 0x743   : > { %v1355_v0 = vpop.xlane.xlu1 %1354 }
 0x744   : > { %v1356_v1 = vsub.f32 %v1349_v61, %v1355_v0 }
 0x746   : > { %v1357_v2 = vmul.f32 1.442695, %v1356_v1 }
 0x747   : > { %v1365_v3 = vpop.permute.xlu1 %1364 }
 0x748   : > { %5683 = vpow2.f32 %v1357_v2  ;;  %5344 = vmatpush3.msra.mxu1 %v1365_v3 }
 0x749   : > { %5353 = vmatprep.subr.mxu1 %v5935_v12 }
 0x74b   : > { %v1517_v10 = vpop.permute.xlu1 %1516 }
 0x755   : > { %v5684_v4 = vpop.eup %5683 }
 0x756   : > { %v1359_v5 = vsel %vm797_vm2, %v5684_v4, 0.0 }
 0x757   : > { %1360 = vadd.xlane.f32.xlu0 %v1359_v5 }
 0x76d   : > { %1518 = vrot.lane.b32.xlu0 %v6236_v20, %s5942_s21 }
 0x7e0   : > { %v1361_v6 = vpop.xlane.xlu0 %1360 }
 0x7e1   : > { %5685 = vrcp.f32 %v1361_v6  ;;  %v6392_v6 = vld [vmem:[%s6755_s6 + $0x20] sm:$0xff] }
 0x7e4   : > { %v1519_v9 = vpop.permute.xlu0 %1518 }
 0x7ee   : > { %v5686_v7 = vpop.eup %5685 }
 0x7ef   : > { %v1363_v8 = vmul.f32 %v5686_v7, %v5684_v4  ;;  %v6398_v7 = vld [vmem:[%s6755_s6 + $0x28] sm:$0xff] }
 0x7f1   : > { %5346 = vmatmul.mubr.msk.f32.vlgmr.msra.gmra.mxu1 %vm797_vm2, %v1363_v8 }
 0x7f2   : > { %5354 = vmatpush3.xpose.msk.msra.mxu1 %vm797_vm2, %v1519_v9  ;;  %5355 = vmatprep.mubr.msk.f32.mxu1 %vm5936_vm1, %v5935_v12 }
 0x7f3   : > { %5363 = vmatprep.subr.mxu1 %v5935_v12 }
 0x7f5   : > { %5356 = vmatmul.mubr.msk.f32.vlgmr.msra.gmra.mxu1 %vm797_vm2, %v1517_v10 }
 0x7f6   : > { %5365 = vmatprep.mubr.msk.f32.mxu1 %vm5936_vm1, %v5935_v12  ;;  %5364 = vmatpush3.msra.mxu1 %v6360_v38 }
 0x7f7   : > { %5373 = vmatprep.subr.mxu1 %v5935_v12 }
 0x8b1   : > { %v1436_v13 = vpop.f32.mrf.mxu1 }
 0x8b2   : > { %5351 = vmatmul.mubr.msk.f32.vlgmr.msra.gmra.mxu0 %vm797_vm2, %v1436_v13 }
 0x8b3   : > { %v5347_v14 = vpop.f32.mrf.mxu1  ;;  %5360 = vmatprep.mubr.msk.f32.mxu0 %vm5936_vm1, %v5935_v12 }
 0x8b5   : > { %v1590_v15 = vpop.f32.mrf.mxu1 }
 0x8b6   : > { %v1594_v17 = vsel %vm797_vm2, %v1590_v15, -inf }
 0x8b7   : > { %1595 = vmax.xlane.f32.xlu1 %v1594_v17  ;;  %v5357_v18 = vpop.f32.mrf.mxu1 }
 0x8c8   : > { %1605 = vrot.lane.b32.xlu1 %v6236_v20, %s5943_s27 }
 0x8cc   : > { %1757 = vrot.lane.b32.xlu1 %v6242_v22, %s5937_s15 }
 0x8d0   : > { %1926 = vrot.lane.b32.xlu1 %v6242_v22, %s5944_s29 }
 0x8d4   : > { %1924 = vrot.lane.b32.xlu1 %v6242_v22, %s5939_s2 }
 0x940   : > { %v1596_v21 = vpop.xlane.xlu1 %1595 }
 0x941   : > { %v1597_v23 = vsub.f32 %v1590_v15, %v1596_v21 }
 0x943   : > { %v1598_v24 = vmul.f32 1.442695, %v1597_v23 }
 0x944   : > { %v1606_v25 = vpop.permute.xlu1 %1605 }
 0x945   : > { %5687 = vpow2.f32 %v1598_v24  ;;  %5359 = vmatpush3.msra.mxu0 %v1606_v25 }
 0x946   : > { %5368 = vmatprep.subr.mxu0 %v5935_v12 }
 0x948   : > { %v1758_v32 = vpop.permute.xlu1 %1757 }
 0x94c   : > { %v1927_v36 = vpop.permute.xlu1 %1926 }
 0x950   : > { %v1925_v37 = vpop.permute.xlu1 %1924 }
 0x952   : > { %v5688_v26 = vpop.eup %5687 }
 0x953   : > { %v1600_v20 = vsel %vm797_vm2, %v5688_v26, 0.0 }
 0x954   : > { %1601 = vadd.xlane.f32.xlu0 %v1600_v20 }
 0x96a   : > { %1759 = vrot.lane.b32.xlu0 %v6242_v22, %s5945_s18 }
 0x972   : > { %v1511_v28 = vpop.f32.mrf.mxu0 }
 0x973   : > { %v1515_v29 = vadd.f32 %v1511_v28, %v1272_v27 }
 0x974   : > { %v5352_v30 = vpop.f32.mrf.mxu0 }
 0x9dd   : > { %v1602_v31 = vpop.xlane.xlu0 %1601 }
 0x9de   : > { %5689 = vrcp.f32 %v1602_v31 }
 0x9e1   : > { %v1760_v35 = vpop.permute.xlu0 %1759 }
 0x9eb   : > { %v5690_v33 = vpop.eup %5689 }
 0x9ec   : > { %v1604_v34 = vmul.f32 %v5690_v33, %v5688_v26 }
 0x9ee   : > { %5361 = vmatmul.mubr.msk.f32.vlgmr.msra.gmra.mxu0 %vm797_vm2, %v1604_v34 }
 0x9ef   : > { %5369 = vmatpush3.xpose.msk.msra.mxu0 %vm797_vm2, %v1760_v35  ;;  %5370 = vmatprep.mubr.msk.f32.mxu0 %vm5936_vm1, %v5935_v12 }
 0x9f0   : > { %5378 = vmatprep.subr.mxu0 %v5935_v12 }
 0x9f2   : > { %5371 = vmatmul.mubr.msk.f32.vlgmr.msra.gmra.mxu0 %vm797_vm2, %v1758_v32 }
 0x9f3   : > { %5379 = vmatpush3.xpose.msk.msra.mxu0 %vm797_vm2, %v1927_v36  ;;  %5380 = vmatprep.mubr.msk.f32.mxu0 %vm5936_vm1, %v5935_v12 }
 0x9f4   : > { %5388 = vmatprep.subr.mxu0 %v5935_v12 }
 0x9f6   : > { %5381 = vmatmul.mubr.msk.f32.vlgmr.msra.gmra.mxu0 %vm797_vm2, %v1925_v37 }
 0x9f7   : > { %5390 = vmatprep.mubr.msk.f32.mxu0 %vm5936_vm1, %v5935_v12  ;;  %5389 = vmatpush3.msra.mxu0 %v6398_v7 }
 0x9f8   : > { %5398 = vmatprep.subr.mxu0 %v5935_v12 }
 0xaae   : > { %v1677_v39 = vpop.f32.mrf.mxu0 }
 0xaaf   : > { %5366 = vmatmul.mubr.msk.f32.vlgmr.msra.gmra.mxu1 %vm797_vm2, %v1677_v39  ;;  %v6434_v39 = vld [vmem:[%s6755_s6 + $0x30] sm:$0xff] }
 0xab0   : > { %v5362_v40 = vpop.f32.mrf.mxu0  ;;  %5375 = vmatprep.mubr.msk.f32.mxu1 %vm5936_vm1, %v5935_v12 }
 0xab2   : > { %v1831_v41 = vpop.f32.mrf.mxu0 }
 0xab3   : > { %v1835_v42 = vsel %vm797_vm2, %v1831_v41, -inf }
 0xab4   : > { %1836 = vmax.xlane.f32.xlu1 %v1835_v42  ;;  %v5372_v43 = vpop.f32.mrf.mxu0 }
 0xab6   : > { %v1998_v44 = vpop.f32.mrf.mxu0 }
 0xab7   : > { %v2002_v45 = vsel %vm797_vm2, %v1998_v44, -inf }
 0xab8   : > { %2003 = vmax.xlane.f32.xlu0 %v2002_v45  ;;  %v5382_v46 = vpop.f32.mrf.mxu0 }
 0xb3d   : > { %v1837_v47 = vpop.xlane.xlu1 %1836 }
 0xb3e   : > { %v1838_v49 = vsub.f32 %v1831_v41, %v1837_v47 }
 0xb40   : > { %v1839_v50 = vmul.f32 1.442695, %v1838_v49 }
 0xb41   : > { %v2004_v51 = vpop.xlane.xlu0 %2003 }
 0xb42   : > { %5691 = vpow2.f32 %v1839_v50  ;;  %v2005_v53 = vsub.f32 %v1998_v44, %v2004_v51 }
 0xb44   : > { %v2006_v54 = vmul.f32 1.442695, %v2005_v53 }
 0xb46   : > { %5693 = vpow2.f32 %v2006_v54 }
 0xb4f   : > { %v5692_v55 = vpop.eup %5691 }
 0xb50   : > { %v1841_v56 = vsel %vm797_vm2, %v5692_v55, 0.0 }
 0xb51   : > { %1842 = vadd.xlane.f32.xlu0 %v1841_v56 }
 0xb53   : > { %v5694_v57 = vpop.eup %5693 }
 0xb54   : > { %v2008_v58 = vsel %vm797_vm2, %v5694_v57, 0.0 }
 0xb55   : > { %2009 = vadd.xlane.f32.xlu1 %v2008_v58 }
 0xb66   : > { %2013 = vrot.lane.b32.xlu1 %v6242_v22, %s6779_s8  ;;  %s6780_s8 = smov 16  }
 0xb67   : > { %1846 = vrot.lane.b32.xlu0 %v6242_v22, %s6778_s19 }
 0xb6a   : > { %2239 = vrot.lane.b32.xlu1 %v6242_v22, %s6777_s30  ;;  %s6814_s30 = sshll.u32 %s6186_s20, 4 }
 0xb6b   : > { %2237 = vrot.lane.b32.xlu0 %v6242_v22, %s5941_s17 }
 0xb6f   : > { %v1752_v59 = vpop.f32.mrf.mxu1 }
 0xb70   : > { %v6379_v60 = vadd.f32 %v1752_v59, %v1515_v29 }
 0xb71   : > { %v5367_v61 = vpop.f32.mrf.mxu1 }
 0xb72   : > { %v6470_v61 = vld [vmem:[%s6755_s6 + $0x38] sm:$0xff] }
 0xbda   : > { %v1843_v62 = vpop.xlane.xlu0 %1842 }
 0xbdb   : > { %5695 = vrcp.f32 %v1843_v62 }
 0xbde   : > { %v2010_v63 = vpop.xlane.xlu1 %2009  ;;  %v1847_v0 = vpop.permute.xlu0 %1846 }
 0xbdf   : > { %5697 = vrcp.f32 %v2010_v63  ;;  %5374 = vmatpush3.msra.mxu1 %v1847_v0 }
 0xbe0   : > { %5383 = vmatprep.subr.mxu1 %v5935_v12 }
 0xbe2   : > { %v2014_v3 = vpop.permute.xlu1 %2013  ;;  %v2238_v15 = vpop.permute.xlu0 %2237 }
 0xbe6   : > { %v2240_v13 = vpop.permute.xlu1 %2239 }
 0xbe8   : > { %v5696_v1 = vpop.eup %5695 }
 0xbe9   : > { %v1845_v2 = vmul.f32 %v5696_v1, %v5692_v55 }
 0xbeb   : > { %5376 = vmatmul.mubr.msk.f32.vlgmr.msra.gmra.mxu1 %vm797_vm2, %v1845_v2 }
 0xbec   : > { %v5698_v4 = vpop.eup %5697  ;;  %5384 = vmatpush3.msra.mxu1 %v2014_v3  ;;  %5385 = vmatprep.mubr.msk.f32.mxu1 %vm5936_vm1, %v5935_v12 }
 0xbed   : > { %v2012_v5 = vmul.f32 %v5698_v4, %v5694_v57  ;;  %5393 = vmatprep.subr.mxu1 %v5935_v12 }
 0xbef   : > { %5386 = vmatmul.mubr.msk.f32.vlgmr.msra.gmra.mxu1 %vm797_vm2, %v2012_v5 }
 0xbf0   : > { %5395 = vmatprep.mubr.msk.f32.mxu1 %vm5936_vm1, %v5935_v12  ;;  %5394 = vmatpush3.msra.mxu1 %v6392_v6 }
 0xbf1   : > { %5403 = vmatprep.subr.mxu1 %v5935_v12 }
 0xcab   : > { %v1918_v8 = vpop.f32.mrf.mxu1 }
 0xcac   : > { %5396 = vmatmul.mubr.msk.f32.vlgmr.msra.gmra.mxu1 %vm797_vm2, %v1918_v8 }
 0xcad   : > { %v5377_v9 = vpop.f32.mrf.mxu1  ;;  %5405 = vmatprep.mubr.msk.f32.mxu1 %vm5936_vm1, %v5935_v12 }
 0xcaf   : > { %v2085_v10 = vpop.f32.mrf.mxu1 }
 0xcb0   : > { %5391 = vmatmul.mubr.msk.f32.vlgmr.msra.gmra.mxu0 %vm797_vm2, %v2085_v10 }
 0xcb1   : > { %5399 = vmatpush3.xpose.msk.msra.mxu0 %vm797_vm2, %v2240_v13  ;;  %v5387_v14 = vpop.f32.mrf.mxu1  ;;  %5400 = vmatprep.mubr.msk.f32.mxu0 %vm5936_vm1, %v5935_v12 }
 0xcb2   : > { %5408 = vmatprep.subr.mxu0 %v5935_v12 }
 0xcb4   : > { %5401 = vmatmul.mubr.msk.f32.vlgmr.msra.gmra.mxu0 %vm797_vm2, %v2238_v15 }
 0xcb5   : > { %5410 = vmatprep.mubr.msk.f32.mxu0 %vm5936_vm1, %v5935_v12  ;;  %5409 = vmatpush3.msra.mxu0 %v6434_v39 }
 0xcb6   : > { %5418 = vmatprep.subr.mxu0 %v5935_v12 }
 0xd6c   : > { %v2233_v17 = vpop.f32.mrf.mxu1 }
 0xd6e   : > { %v5397_v18 = vpop.f32.mrf.mxu1 }
 0xd70   : > { %v2160_v21 = vpop.f32.mrf.mxu0 }
 0xd71   : > { %v2234_v23 = vadd.f32 %v2233_v17, %v2160_v21 }
 0xd72   : > { %v5392_v24 = vpop.f32.mrf.mxu0 }
 0xd74   : > { %v2311_v25 = vpop.f32.mrf.mxu0 }
 0xd75   : > { %v2315_v26 = vsel %vm797_vm2, %v2311_v25, -inf }
 0xd76   : > { %2316 = vmax.xlane.f32.xlu1 %v2315_v26  ;;  %v5402_v20 = vpop.f32.mrf.mxu0 }
 0xd87   : > { %2480 = vrot.lane.b32.xlu1 %v6242_v22, %s5949_s23 }
 0xd8b   : > { %2478 = vrot.lane.b32.xlu1 %v6242_v22, %s5943_s27 }
 0xdff   : > { %v2317_v27 = vpop.xlane.xlu1 %2316 }
 0xe00   : > { %v2318_v28 = vsub.f32 %v2311_v25, %v2317_v27 }
 0xe02   : > { %v2319_v29 = vmul.f32 1.442695, %v2318_v28 }
 0xe03   : > { %v2481_v35 = vpop.permute.xlu1 %2480 }
 0xe04   : > { %5699 = vpow2.f32 %v2319_v29 }
 0xe07   : > { %v2479_v37 = vpop.permute.xlu1 %2478 }
 0xe11   : > { %v5700_v30 = vpop.eup %5699 }
 0xe12   : > { %v2321_v31 = vsel %vm797_vm2, %v5700_v30, 0.0 }
 0xe13   : > { %2322 = vadd.xlane.f32.xlu0 %v2321_v31 }
 0xe29   : > { %2326 = vrot.lane.b32.xlu0 %v6242_v22, %s6780_s8  ;;  %s5951_s8 = smov 8  }
 0xe9c   : > { %v2323_v32 = vpop.xlane.xlu0 %2322 }
 0xe9d   : > { %5701 = vrcp.f32 %v2323_v32 }
 0xea0   : > { %v2327_v33 = vpop.permute.xlu0 %2326 }
 0xea1   : > { %5404 = vmatpush3.msra.mxu1 %v2327_v33 }
 0xea2   : > { %5413 = vmatprep.subr.mxu1 %v5935_v12 }
 0xeaa   : > { %v5702_v34 = vpop.eup %5701 }
 0xeab   : > { %v2325_v36 = vmul.f32 %v5702_v34, %v5700_v30 }
 0xead   : > { %5406 = vmatmul.mubr.msk.f32.vlgmr.msra.gmra.mxu1 %vm797_vm2, %v2325_v36 }
 0xeae   : > { %5414 = vmatpush3.xpose.msk.msra.mxu1 %vm797_vm2, %v2481_v35  ;;  %5415 = vmatprep.mubr.msk.f32.mxu1 %vm5936_vm1, %v5935_v12 }
 0xeaf   : > { %5423 = vmatprep.subr.mxu1 %v5935_v12 }
 0xeb1   : > { %5416 = vmatmul.mubr.msk.f32.vlgmr.msra.gmra.mxu1 %vm797_vm2, %v2479_v37 }
 0xeb2   : > { %5425 = vmatprep.mubr.msk.f32.mxu1 %vm5936_vm1, %v5935_v12  ;;  %5424 = vmatpush3.msra.mxu1 %v6470_v61 }
 0xeb3   : > { %5433 = vmatprep.subr.mxu1 %v5935_v12 }
 0xf6d   : > { %v2398_v40 = vpop.f32.mrf.mxu1 }
 0xf6e   : > { %5411 = vmatmul.mubr.msk.f32.vlgmr.msra.gmra.mxu0 %vm797_vm2, %v2398_v40 }
 0xf6f   : > { %v5407_v41 = vpop.f32.mrf.mxu1  ;;  %5420 = vmatprep.mubr.msk.f32.mxu0 %vm5936_vm1, %v5935_v12 }
 0xf71   : > { %v2552_v42 = vpop.f32.mrf.mxu1 }
 0xf72   : > { %v2556_v43 = vsel %vm797_vm2, %v2552_v42, -inf }
 0xf73   : > { %2557 = vmax.xlane.f32.xlu0 %v2556_v43  ;;  %v5417_v44 = vpop.f32.mrf.mxu1 }
 0xf89   : > { %2567 = vrot.lane.b32.xlu0 %v6242_v22, %s5951_s8 }
 0xf8d   : > { %2883 = vrot.lane.b32.xlu0 %v6234_v19, %s5938_s26 }
 0xffc   : > { %v2558_v45 = vpop.xlane.xlu0 %2557 }
 0xffd   : > { %v2559_v46 = vsub.f32 %v2552_v42, %v2558_v45 }
 0xfff   : > { %v2560_v47 = vmul.f32 1.442695, %v2559_v46 }
0x1000   : > { %v2568_v49 = vpop.permute.xlu0 %2567 }
0x1001   : > { %5703 = vpow2.f32 %v2560_v47  ;;  %5419 = vmatpush3.msra.mxu0 %v2568_v49 }
0x1002   : > { %5428 = vmatprep.subr.mxu0 %v5935_v12 }
0x1004   : > { %v2884_v59 = vpop.permute.xlu0 %2883 }
0x100e   : > { %v5704_v50 = vpop.eup %5703 }
0x100f   : > { %v2562_v51 = vsel %vm797_vm2, %v5704_v50, 0.0 }
0x1010   : > { %2563 = vadd.xlane.f32.xlu1 %v2562_v51 }
0x1021   : > { %2885 = vrot.lane.b32.xlu1 %v6232_v16, %s5938_s26  ;;  %s599_s26 = scalar_lea.vmem [#allocation10], %s6814_s30 }
0x1022   : > { %s4936_s19 = sshll.u32 %s599_s26, 4  ;;  %s6704_s19 = int_to_ptr.vmem [resolvable:$true] %s4936_s19 }
0x102e   : > { %v2473_v53 = vpop.f32.mrf.mxu0 }
0x102f   : > { %v2477_v22 = vadd.f32 %v2473_v53, %v2234_v23 }
0x1030   : > { %v5412_v54 = vpop.f32.mrf.mxu0 }
0x1099   : > { %v2564_v55 = vpop.xlane.xlu1 %2563 }
0x109a   : > { %5705 = vrcp.f32 %v2564_v55 }
0x109d   : > { %v2886_v58 = vpop.permute.xlu1 %2885 }
0x10a7   : > { %v5706_v56 = vpop.eup %5705 }
0x10a8   : > { %v2566_v57 = vmul.f32 %v5706_v56, %v5704_v50 }
0x10aa   : > { %5421 = vmatmul.mubr.msk.f32.vlgmr.msra.gmra.mxu0 %vm797_vm2, %v2566_v57 }
0x10ab   : > { %5429 = vmatpush3.xpose.msk.msra.mxu0 %vm797_vm2, %v6232_v16  ;;  %5430 = vmatprep.mubr.msk.f32.mxu0 %vm5936_vm1, %v5935_v12 }
0x10ac   : > { %5438 = vmatprep.subr.mxu0 %v5935_v12 }
0x10ae   : > { %5431 = vmatmul.mubr.msk.f32.vlgmr.msra.gmra.mxu0 %vm797_vm2, %v6234_v19 }
0x10af   : > { %5439 = vmatpush3.xpose.msk.msra.mxu0 %vm797_vm2, %v2886_v58  ;;  %5440 = vmatprep.mubr.msk.f32.mxu0 %vm5936_vm1, %v5935_v12 }
0x10b0   : > { %5448 = vmatprep.subr.mxu0 %v5935_v12 }
0x10b2   : > { %5441 = vmatmul.mubr.msk.f32.vlgmr.msra.gmra.mxu0 %vm797_vm2, %v2884_v59 }
0x10b3   : > { %5449 = vmatpush3.msra.mxu0 %v6276_v48  ;;  %5450 = vmatprep.mubr.msk.f32.mxu0 %vm5936_vm1, %v5935_v12 }
0x10b4   : > { %5458 = vmatprep.subr.mxu0 %v5935_v12 }
0x116a   : > { %v2639_v62 = vpop.f32.mrf.mxu0 }
0x116b   : > { %5426 = vmatmul.mubr.msk.f32.vlgmr.msra.gmra.mxu1 %vm797_vm2, %v2639_v62 }
0x116c   : > { %v5422_v63 = vpop.f32.mrf.mxu0  ;;  %5435 = vmatprep.mubr.msk.f32.mxu1 %vm5936_vm1, %v5935_v12 }
0x116e   : > { %v2792_v48 = vpop.f32.mrf.mxu0 }
0x116f   : > { %v2796_v0 = vsel %vm797_vm2, %v2792_v48, -inf }
0x1170   : > { %2797 = vmax.xlane.f32.xlu1 %v2796_v0  ;;  %v5432_v1 = vpop.f32.mrf.mxu0 }
0x1172   : > { %v2957_v2 = vpop.f32.mrf.mxu0 }
0x1173   : > { %v2961_v3 = vsel %vm797_vm2, %v2957_v2, -inf }
0x1174   : > { %2962 = vmax.xlane.f32.xlu0 %v2961_v3  ;;  %v5442_v4 = vpop.f32.mrf.mxu0 }
0x11f9   : > { %v2798_v5 = vpop.xlane.xlu1 %2797 }
0x11fa   : > { %v2799_v8 = vsub.f32 %v2792_v48, %v2798_v5 }
0x11fc   : > { %v2800_v9 = vmul.f32 1.442695, %v2799_v8 }
0x11fd   : > { %v2963_v10 = vpop.xlane.xlu0 %2962 }
0x11fe   : > { %5707 = vpow2.f32 %v2800_v9  ;;  %v2964_v13 = vsub.f32 %v2957_v2, %v2963_v10 }
0x1200   : > { %v2965_v14 = vmul.f32 1.442695, %v2964_v13 }
0x1202   : > { %5709 = vpow2.f32 %v2965_v14 }
0x120b   : > { %v5708_v15 = vpop.eup %5707 }
0x120c   : > { %v2802_v17 = vsel %vm797_vm2, %v5708_v15, 0.0 }
0x120d   : > { %2803 = vadd.xlane.f32.xlu0 %v2802_v17 }
0x120f   : > { %v5710_v18 = vpop.eup %5709 }
0x1210   : > { %v2967_v21 = vsel %vm797_vm2, %v5710_v18, 0.0 }
0x1211   : > { %2968 = vadd.xlane.f32.xlu1 %v2967_v21 }
0x1222   : > { %2972 = vrot.lane.b32.xlu1 %v6232_v16, %s5939_s2 }
0x1223   : > { %2807 = vrot.lane.b32.xlu0 %v6232_v16, %s5937_s15 }
0x1226   : > { %3196 = vrot.lane.b32.xlu1 %v6232_v16, %s5940_s4 }
0x1227   : > { %3194 = vrot.lane.b32.xlu0 %v6234_v19, %s5940_s4  ;;  %s6811_s4 = smov 48  }
0x122b   : > { %v2714_v23 = vpop.f32.mrf.mxu1 }
0x122c   : > { %v2718_v24 = vadd.f32 %v2714_v23, %v2477_v22 }
0x122d   : > { %v5427_v25 = vpop.f32.mrf.mxu1 }
0x122e   : > { %v6490_v26 = vadd.f32 %v2718_v24, %v6379_v60 }
0x1296   : > { %v2804_v20 = vpop.xlane.xlu0 %2803 }
0x1297   : > { %5711 = vrcp.f32 %v2804_v20 }
0x129a   : > { %v2969_v27 = vpop.xlane.xlu1 %2968  ;;  %v2808_v28 = vpop.permute.xlu0 %2807 }
0x129b   : > { %5713 = vrcp.f32 %v2969_v27  ;;  %5434 = vmatpush3.msra.mxu1 %v2808_v28 }
0x129c   : > { %5443 = vmatprep.subr.mxu1 %v5935_v12 }
0x129e   : > { %v2973_v31 = vpop.permute.xlu1 %2972 }
0x12a2   : > { %v3197_v36 = vpop.permute.xlu1 %3196 }
0x12a4   : > { %v5712_v29 = vpop.eup %5711 }
0x12a5   : > { %v2806_v30 = vmul.f32 %v5712_v29, %v5708_v15 }
0x12a7   : > { %5436 = vmatmul.mubr.msk.f32.vlgmr.msra.gmra.mxu1 %vm797_vm2, %v2806_v30 }
0x12a8   : > { %v5714_v32 = vpop.eup %5713  ;;  %5444 = vmatpush3.msra.mxu1 %v2973_v31  ;;  %5445 = vmatprep.mubr.msk.f32.mxu1 %vm5936_vm1, %v5935_v12 }
0x12a9   : > { %v2971_v60 = vmul.f32 %v5714_v32, %v5710_v18  ;;  %5453 = vmatprep.subr.mxu1 %v5935_v12 }
0x12ab   : > { %5446 = vmatmul.mubr.msk.f32.vlgmr.msra.gmra.mxu1 %vm797_vm2, %v2971_v60 }
0x12ac   : > { %5454 = vmatpush3.msra.mxu1 %v6283_v52  ;;  %5455 = vmatprep.mubr.msk.f32.mxu1 %vm5936_vm1, %v5935_v12  ;;  %v3195_v52 = vpop.permute.xlu0 %3194 }
0x12ad   : > { %5463 = vmatprep.subr.mxu1 %v5935_v12 }
0x1367   : > { %v2879_v33 = vpop.f32.mrf.mxu1 }
0x1368   : > { %5456 = vmatmul.mubr.msk.f32.vlgmr.msra.gmra.mxu1 %vm797_vm2, %v2879_v33 }
0x1369   : > { %v5437_v34 = vpop.f32.mrf.mxu1  ;;  %5465 = vmatprep.mubr.msk.f32.mxu1 %vm5936_vm1, %v5935_v12 }
0x136b   : > { %v3044_v35 = vpop.f32.mrf.mxu1 }
0x136c   : > { %5451 = vmatmul.mubr.msk.f32.vlgmr.msra.gmra.mxu0 %vm797_vm2, %v3044_v35 }
0x136d   : > { %5459 = vmatpush3.xpose.msk.msra.mxu0 %vm797_vm2, %v3197_v36  ;;  %v5447_v37 = vpop.f32.mrf.mxu1  ;;  %5460 = vmatprep.mubr.msk.f32.mxu0 %vm5936_vm1, %v5935_v12 }
0x136e   : > { %5468 = vmatprep.subr.mxu0 %v5935_v12 }
0x1370   : > { %5461 = vmatmul.mubr.msk.f32.vlgmr.msra.gmra.mxu0 %vm797_vm2, %v3195_v52 }
0x1371   : > { %5469 = vmatpush3.msra.mxu0 %v6323_v11  ;;  %5470 = vmatprep.mubr.msk.f32.mxu0 %vm5936_vm1, %v5935_v12 }
0x1372   : > { %5478 = vmatprep.subr.mxu0 %v5935_v12 }
0x1428   : > { %v3190_v40 = vpop.f32.mrf.mxu1 }
0x142a   : > { %v5457_v41 = vpop.f32.mrf.mxu1 }
0x142c   : > { %v3117_v42 = vpop.f32.mrf.mxu0 }
0x142d   : > { %v3191_v43 = vadd.f32 %v3190_v40, %v3117_v42 }
0x142e   : > { %v5452_v44 = vpop.f32.mrf.mxu0 }
0x1430   : > { %v3268_v45 = vpop.f32.mrf.mxu0 }
0x1431   : > { %v3272_v46 = vsel %vm797_vm2, %v3268_v45, -inf }
0x1432   : > { %3273 = vmax.xlane.f32.xlu1 %v3272_v46  ;;  %v5462_v47 = vpop.f32.mrf.mxu0 }
0x1443   : > { %3435 = vrot.lane.b32.xlu1 %v6232_v16, %s5942_s21 }
0x1447   : > { %3433 = vrot.lane.b32.xlu1 %v6234_v19, %s5942_s21  ;;  %s5855_s21 = scalar_lea.vmem %s6704_s19, 256 }
0x1448   : > { %p5856_p1 = scmp.ne.s32.totalorder %s6704_s19, %s5855_s21 }
0x144a   : > { %p5857_p9 = pnand %p5856_p1, %p6816_p12 }
0x144b   : > { %3674 = vrot.lane.b32.xlu1 %v6234_v19, %s5945_s18  ;;  %s6813_s18 = sld [smem:[#allocation23_spill]] }
0x144c   : > { %p5858_p13 = pneg %p5857_p9 }
0x14bb   : > { %v3274_v11 = vpop.xlane.xlu1 %3273 }
0x14bc   : > { %v3275_v49 = vsub.f32 %v3268_v45, %v3274_v11 }
0x14be   : > { %v3276_v50 = vmul.f32 1.442695, %v3275_v49 }
0x14bf   : > { %v3436_v56 = vpop.permute.xlu1 %3435 }
0x14c0   : > { %5715 = vpow2.f32 %v3276_v50 }
0x14c3   : > { %v3434_v58 = vpop.permute.xlu1 %3433 }
0x14c7   : > { %v3675_v10 = vpop.permute.xlu1 %3674 }
0x14cd   : > { %v5716_v51 = vpop.eup %5715 }
0x14ce   : > { %v3278_v53 = vsel %vm797_vm2, %v5716_v51, 0.0 }
0x14cf   : > { %3279 = vadd.xlane.f32.xlu0 %v3278_v53 }
0x14e5   : > { %3283 = vrot.lane.b32.xlu0 %v6232_v16, %s5941_s17 }
0x1558   : > { %v3280_v22 = vpop.xlane.xlu0 %3279 }
0x1559   : > { %5717 = vrcp.f32 %v3280_v22 }
0x155c   : > { %v3284_v54 = vpop.permute.xlu0 %3283 }
0x155d   : > { %5464 = vmatpush3.msra.mxu1 %v3284_v54 }
0x155e   : > { %5473 = vmatprep.subr.mxu1 %v5935_v12 }
0x1566   : > { %v5718_v55 = vpop.eup %5717 }
0x1567   : > { %v3282_v57 = vmul.f32 %v5718_v55, %v5716_v51 }
0x1569   : > { %5466 = vmatmul.mubr.msk.f32.vlgmr.msra.gmra.mxu1 %vm797_vm2, %v3282_v57 }
0x156a   : > { %5474 = vmatpush3.xpose.msk.msra.mxu1 %vm797_vm2, %v3436_v56  ;;  %5475 = vmatprep.mubr.msk.f32.mxu1 %vm5936_vm1, %v5935_v12 }
0x156b   : > { %5483 = vmatprep.subr.mxu1 %v5935_v12 }
0x156d   : > { %5476 = vmatmul.mubr.msk.f32.vlgmr.msra.gmra.mxu1 %vm797_vm2, %v3434_v58 }
0x156e   : > { %5484 = vmatpush3.msra.mxu1 %v6360_v38  ;;  %5485 = vmatprep.mubr.msk.f32.mxu1 %vm5936_vm1, %v5935_v12 }
0x156f   : > { %5493 = vmatprep.subr.mxu1 %v5935_v12 }
0x1629   : > { %v3355_v59 = vpop.f32.mrf.mxu1 }
0x162a   : > { %5471 = vmatmul.mubr.msk.f32.vlgmr.msra.gmra.mxu0 %vm797_vm2, %v3355_v59 }
0x162b   : > { %v5467_v62 = vpop.f32.mrf.mxu1  ;;  %5480 = vmatprep.mubr.msk.f32.mxu0 %vm5936_vm1, %v5935_v12 }
0x162d   : > { %v3507_v63 = vpop.f32.mrf.mxu1 }
0x162e   : > { %v3511_v48 = vsel %vm797_vm2, %v3507_v63, -inf }
0x162f   : > { %3512 = vmax.xlane.f32.xlu0 %v3511_v48  ;;  %v5477_v0 = vpop.f32.mrf.mxu1 }
0x1645   : > { %3522 = vrot.lane.b32.xlu0 %v6232_v16, %s5943_s27 }
0x1649   : > { %3672 = vrot.lane.b32.xlu0 %v6234_v19, %s5937_s15  ;;  %s6809_s15 = smov 24  }
0x164d   : > { %3837 = vrot.lane.b32.xlu0 %v6234_v19, %s5939_s2  ;;  %s6810_s2 = smov 32  }
0x16b8   : > { %v3513_v38 = vpop.xlane.xlu0 %3512 }
0x16b9   : > { %v3514_v1 = vsub.f32 %v3507_v63, %v3513_v38 }
0x16bb   : > { %v3515_v2 = vmul.f32 1.442695, %v3514_v1 }
0x16bc   : > { %v3523_v3 = vpop.permute.xlu0 %3522 }
0x16bd   : > { %5719 = vpow2.f32 %v3515_v2  ;;  %5479 = vmatpush3.msra.mxu0 %v3523_v3 }
0x16be   : > { %5488 = vmatprep.subr.mxu0 %v5935_v12 }
0x16c0   : > { %v3673_v17 = vpop.permute.xlu0 %3672 }
0x16c4   : > { %v3838_v21 = vpop.permute.xlu0 %3837 }
0x16ca   : > { %v5720_v4 = vpop.eup %5719 }
0x16cb   : > { %v3517_v5 = vsel %vm797_vm2, %v5720_v4, 0.0 }
0x16cc   : > { %3518 = vadd.xlane.f32.xlu1 %v3517_v5 }
0x16dd   : > { %3839 = vrot.lane.b32.xlu1 %v6234_v19, %s5944_s29 }
0x16ea   : > { %v3428_v16 = vpop.f32.mrf.mxu0 }
0x16eb   : > { %v3432_v8 = vadd.f32 %v3428_v16, %v3191_v43 }
0x16ec   : > { %v5472_v9 = vpop.f32.mrf.mxu0 }
0x1755   : > { %v3519_v13 = vpop.xlane.xlu1 %3518 }
0x1756   : > { %5721 = vrcp.f32 %v3519_v13 }
0x1759   : > { %v3840_v18 = vpop.permute.xlu1 %3839 }
0x1763   : > { %v5722_v14 = vpop.eup %5721 }
0x1764   : > { %v3521_v15 = vmul.f32 %v5722_v14, %v5720_v4 }
0x1766   : > { %5481 = vmatmul.mubr.msk.f32.vlgmr.msra.gmra.mxu0 %vm797_vm2, %v3521_v15 }
0x1767   : > { %5489 = vmatpush3.xpose.msk.msra.mxu0 %vm797_vm2, %v3675_v10  ;;  %5490 = vmatprep.mubr.msk.f32.mxu0 %vm5936_vm1, %v5935_v12 }
0x1768   : > { %5498 = vmatprep.subr.mxu0 %v5935_v12 }
0x176a   : > { %5491 = vmatmul.mubr.msk.f32.vlgmr.msra.gmra.mxu0 %vm797_vm2, %v3673_v17 }
0x176b   : > { %5499 = vmatpush3.xpose.msk.msra.mxu0 %vm797_vm2, %v3840_v18  ;;  %5500 = vmatprep.mubr.msk.f32.mxu0 %vm5936_vm1, %v5935_v12 }
0x176c   : > { %5508 = vmatprep.subr.mxu0 %v5935_v12 }
0x176e   : > { %5501 = vmatmul.mubr.msk.f32.vlgmr.msra.gmra.mxu0 %vm797_vm2, %v3838_v21 }
0x176f   : > { %5509 = vmatpush3.msra.mxu0 %v6398_v7  ;;  %5510 = vmatprep.mubr.msk.f32.mxu0 %vm5936_vm1, %v5935_v12 }
0x1770   : > { %5518 = vmatprep.subr.mxu0 %v5935_v12 }
0x1826   : > { %v3594_v23 = vpop.f32.mrf.mxu0 }
0x1827   : > { %5486 = vmatmul.mubr.msk.f32.vlgmr.msra.gmra.mxu1 %vm797_vm2, %v3594_v23 }
0x1828   : > { %v5482_v24 = vpop.f32.mrf.mxu0  ;;  %5495 = vmatprep.mubr.msk.f32.mxu1 %vm5936_vm1, %v5935_v12 }
0x182a   : > { %v3746_v25 = vpop.f32.mrf.mxu0 }
0x182b   : > { %v3750_v20 = vsel %vm797_vm2, %v3746_v25, -inf }
0x182c   : > { %3751 = vmax.xlane.f32.xlu1 %v3750_v20  ;;  %v5492_v27 = vpop.f32.mrf.mxu0 }
0x182e   : > { %v3911_v28 = vpop.f32.mrf.mxu0 }
0x182f   : > { %v3915_v7 = vsel %vm797_vm2, %v3911_v28, -inf }
0x1830   : > { %3916 = vmax.xlane.f32.xlu0 %v3915_v7  ;;  %v5502_v29 = vpop.f32.mrf.mxu0 }
0x18b5   : > { %v3752_v30 = vpop.xlane.xlu1 %3751 }
0x18b6   : > { %v3753_v31 = vsub.f32 %v3746_v25, %v3752_v30  ;;  %v5747_v25 = vld [vmem:[%s6211_s16] sm:$0xff] }
0x18b7   : > { %v4627_v20 = vadd.f32 %v5747_v25, %v6490_v26 }
0x18b8   : > { %v3754_v32 = vmul.f32 1.442695, %v3753_v31 }
0x18b9   : > { %v3917_v60 = vpop.xlane.xlu0 %3916 }
0x18ba   : > { %5723 = vpow2.f32 %v3754_v32  ;;  %v3918_v33 = vsub.f32 %v3911_v28, %v3917_v60 }
0x18bc   : > { %v3919_v34 = vmul.f32 1.442695, %v3918_v33 }
0x18be   : > { %5725 = vpow2.f32 %v3919_v34 }
0x18c7   : > { %v5724_v35 = vpop.eup %5723 }
0x18c8   : > { %v3756_v36 = vsel %vm797_vm2, %v5724_v35, 0.0 }
0x18c9   : > { %3757 = vadd.xlane.f32.xlu0 %v3756_v36 }
0x18cb   : > { %v5726_v37 = vpop.eup %5725 }
0x18cc   : > { %v3921_v52 = vsel %vm797_vm2, %v5726_v37, 0.0 }
0x18cd   : > { %3922 = vadd.xlane.f32.xlu1 %v3921_v52 }
0x18de   : > { %3926 = vrot.lane.b32.xlu1 %v6234_v19, %s6809_s15 }
0x18df   : > { %3761 = vrot.lane.b32.xlu0 %v6234_v19, %s6810_s2 }
0x18e2   : > { %4150 = vrot.lane.b32.xlu1 %v6234_v19, %s6811_s4  ;;  %s6815_s4 = sld [smem:[#allocation24_spill]] }
0x18e3   : > { %4148 = vrot.lane.b32.xlu0 %v6234_v19, %s5941_s17  ;;  %s6812_s17 = smov 16  }
0x18e7   : > { %v3667_v40 = vpop.f32.mrf.mxu1 }
0x18e8   : > { %v6580_v41 = vadd.f32 %v3667_v40, %v3432_v8 }
0x18e9   : > { %v5487_v42 = vpop.f32.mrf.mxu1 }
0x1952   : > { %v3758_v43 = vpop.xlane.xlu0 %3757 }
0x1953   : > { %5727 = vrcp.f32 %v3758_v43 }
0x1956   : > { %v3923_v44 = vpop.xlane.xlu1 %3922  ;;  %v3762_v45 = vpop.permute.xlu0 %3761 }
0x1957   : > { %5729 = vrcp.f32 %v3923_v44  ;;  %5494 = vmatpush3.msra.mxu1 %v3762_v45  ;;  %v5748_v44 = vld [vmem:[%s6211_s16 + $0x8] sm:$0xff] }
0x1958   : > { %5503 = vmatprep.subr.mxu1 %v5935_v12 }
0x195a   : > { %v3927_v11 = vpop.permute.xlu1 %3926 }
0x195e   : > { %v4151_v54 = vpop.permute.xlu1 %4150 }
0x1960   : > { %v5728_v46 = vpop.eup %5727 }
0x1961   : > { %v3760_v47 = vmul.f32 %v5728_v46, %v5724_v35 }
0x1963   : > { %5496 = vmatmul.mubr.msk.f32.vlgmr.msra.gmra.mxu1 %vm797_vm2, %v3760_v47 }
0x1964   : > { %v5730_v49 = vpop.eup %5729  ;;  %5504 = vmatpush3.msra.mxu1 %v3927_v11  ;;  %5505 = vmatprep.mubr.msk.f32.mxu1 %vm5936_vm1, %v5935_v12 }
0x1965   : > { %v3925_v50 = vmul.f32 %v5730_v49, %v5726_v37  ;;  %5513 = vmatprep.subr.mxu1 %v5935_v12 }
0x1967   : > { %5506 = vmatmul.mubr.msk.f32.vlgmr.msra.gmra.mxu1 %vm797_vm2, %v3925_v50 }
0x1968   : > { %5514 = vmatpush3.msra.mxu1 %v6392_v6  ;;  %5515 = vmatprep.mubr.msk.f32.mxu1 %vm5936_vm1, %v5935_v12  ;;  %v4149_v6 = vpop.permute.xlu0 %4148 }
0x1969   : > { %5523 = vmatprep.subr.mxu1 %v5935_v12 }
0x1a23   : > { %v3833_v51 = vpop.f32.mrf.mxu1 }
0x1a24   : > { %5516 = vmatmul.mubr.msk.f32.vlgmr.msra.gmra.mxu1 %vm797_vm2, %v3833_v51 }
0x1a25   : > { %v5497_v53 = vpop.f32.mrf.mxu1  ;;  %5525 = vmatprep.mubr.msk.f32.mxu1 %vm5936_vm1, %v5935_v12 }
0x1a27   : > { %v3998_v22 = vpop.f32.mrf.mxu1 }
0x1a28   : > { %5511 = vmatmul.mubr.msk.f32.vlgmr.msra.gmra.mxu0 %vm797_vm2, %v3998_v22 }
0x1a29   : > { %5519 = vmatpush3.xpose.msk.msra.mxu0 %vm797_vm2, %v4151_v54  ;;  %v5507_v55 = vpop.f32.mrf.mxu1  ;;  %5520 = vmatprep.mubr.msk.f32.mxu0 %vm5936_vm1, %v5935_v12 }
0x1a2a   : > { %5528 = vmatprep.subr.mxu0 %v5935_v12 }
0x1a2c   : > { %5521 = vmatmul.mubr.msk.f32.vlgmr.msra.gmra.mxu0 %vm797_vm2, %v4149_v6 }
0x1a2d   : > { %5529 = vmatpush3.msra.mxu0 %v6434_v39  ;;  %5530 = vmatprep.mubr.msk.f32.mxu0 %vm5936_vm1, %v5935_v12 }
0x1a2e   : > { %5538 = vmatprep.subr.mxu0 %v5935_v12 }
0x1ae4   : > { %v4144_v56 = vpop.f32.mrf.mxu1 }
0x1ae6   : > { %v5517_v57 = vpop.f32.mrf.mxu1 }
0x1ae7   : > { %v5145_v57 = vld [vmem:[%s6761_s12] ss:$0 sm:$0xff] }
0x1ae8   : > { %v4071_v58 = vpop.f32.mrf.mxu0 }
0x1ae9   : > { %v4145_v59 = vadd.f32 %v4144_v56, %v4071_v58 }
0x1aea   : > { %v5512_v62 = vpop.f32.mrf.mxu0 }
0x1aec   : > { %v4222_v63 = vpop.f32.mrf.mxu0 }
0x1aed   : > { %v4226_v48 = vsel %vm797_vm2, %v4222_v63, -inf }
0x1aee   : > { %4227 = vmax.xlane.f32.xlu1 %v4226_v48  ;;  %v5522_v0 = vpop.f32.mrf.mxu0  ;;  %v4686_v48 = vld [vmem:[#allocation8 + $0x18] sm:$0xff] }
0x1aef   : > { %v4685_v0 = vld [vmem:[#allocation8 + $0x10] sm:$0xff] }
0x1aff   : > { %4389 = vrot.lane.b32.xlu1 %v6234_v19, %s5949_s23  ;;  %s5161_s23 = sshll.u32 %s6060_s25, 8  ;;  %s4923_s25 = scalar_lea.sflag [#allocation4], %s6186_s20 }
0x1b03   : > { %4387 = vrot.lane.b32.xlu1 %v6234_v19, %s5943_s27  ;;  %s5952_s27 = smov [#allocation10]  }
0x1b04   : > { %s5859_s16 = sshll.u32 %s5952_s27, 4  ;;  %s5860_s16 = int_to_ptr.vmem [resolvable:$false] %s5859_s16 }
0x1b05   : > { %s5861_s29 = scalar_lea.vmem %s5860_s16, 512  ;;  %p5862_p0 = scmp.lt.s32.totalorder %s6704_s19, %s5860_s16 }
0x1b06   : > { %p5863_p2 = scmp.lt.s32.totalorder %s5861_s29, %s5855_s21 }
0x1b08   : > { %p5864_p10 = por %p5863_p2, %p5862_p0 }
0x1b0a   : > { %p5865_p6 = pnand %p5864_p10, %p5858_p13 }
0x1b77   : > { %v4228_v39 = vpop.xlane.xlu1 %4227 }
0x1b78   : > { %v4229_v38 = vsub.f32 %v4222_v63, %v4228_v39  ;;  %v4684_v39 = vld [vmem:[#allocation8 + $0x8] sm:$0xff] }
0x1b7a   : > { %v4230_v1 = vmul.f32 1.442695, %v4229_v38  ;;  %v4683_v38 = vld [vmem:[#allocation8] sm:$0xff] }
0x1b7b   : > { %v4390_v8 = vpop.permute.xlu1 %4389 }
0x1b7c   : > { %5731 = vpow2.f32 %v4230_v1  ;;  %v4784_v1 = vld [vmem:[%s6759_s10 + $0x38] sm:$0xff] }
0x1b7f   : > { %v4388_v10 = vpop.permute.xlu1 %4387 }
0x1b89   : > { %v5732_v2 = vpop.eup %5731 }
0x1b8a   : > { %v4232_v3 = vsel %vm797_vm2, %v5732_v2, 0.0 }
0x1b8b   : > { %4233 = vadd.xlane.f32.xlu0 %v4232_v3  ;;  %v4782_v3 = vld [vmem:[%s6759_s10 + $0x28] sm:$0xff] }
0x1ba1   : > { %4237 = vrot.lane.b32.xlu0 %v6234_v19, %s6812_s17  ;;  %s6702_s17 = scalar_lea.hbm %s6815_s4, %s5161_s23 }
0x1c14   : > { %v4234_v4 = vpop.xlane.xlu0 %4233 }
0x1c15   : > { %5733 = vrcp.f32 %v4234_v4  ;;  %v4781_v4 = vld [vmem:[%s6759_s10 + $0x20] sm:$0xff] }
0x1c18   : > { %v4238_v5 = vpop.permute.xlu0 %4237 }
0x1c19   : > { %5524 = vmatpush3.msra.mxu1 %v4238_v5 }
0x1c1a   : > { %5533 = vmatprep.subr.mxu1 %v5935_v12 }
0x1c22   : > { %v5734_v16 = vpop.eup %5733 }
0x1c23   : > { %v4236_v9 = vmul.f32 %v5734_v16, %v5732_v2  ;;  %v4783_v2 = vld [vmem:[%s6759_s10 + $0x30] sm:$0xff] }
0x1c25   : > { %5526 = vmatmul.mubr.msk.f32.vlgmr.msra.gmra.mxu1 %vm797_vm2, %v4236_v9 }
0x1c26   : > { %5534 = vmatpush3.xpose.msk.msra.mxu1 %vm797_vm2, %v4390_v8  ;;  %5535 = vmatprep.mubr.msk.f32.mxu1 %vm5936_vm1, %v5935_v12 }
0x1c27   : > { %5543 = vmatprep.subr.mxu1 %v5935_v12 }
0x1c29   : > { %5536 = vmatmul.mubr.msk.f32.vlgmr.msra.gmra.mxu1 %vm797_vm2, %v4388_v10 }
0x1c2a   : > { %5544 = vmatpush3.msra.mxu1 %v6470_v61  ;;  %5545 = vmatprep.mubr.msk.f32.mxu1 %vm5936_vm1, %v5935_v12 }
0x1c2b   : > { %5559 = vmatprep.subr.mxu1 %v4784_v1 }
0x1ce5   : > { %v4309_v13 = vpop.f32.mrf.mxu1 }
0x1ce6   : > { %5531 = vmatmul.mubr.msk.f32.vlgmr.msra.gmra.mxu0 %vm797_vm2, %v4309_v13 }
0x1ce7   : > { %v5527_v14 = vpop.f32.mrf.mxu1  ;;  %5540 = vmatprep.mubr.msk.f32.mxu0 %vm5936_vm1, %v5935_v12  ;;  %v5144_v12 = vld [vmem:[%s6756_s7] ss:$0 sm:$0xff] }
0x1ce8   : > { %v4636_v7 = vadd.f32 %v5144_v12, %v4627_v20 }
0x1ce9   : > { %v4461_v15 = vpop.f32.mrf.mxu1 }
0x1cea   : > { %v4465_v17 = vsel %vm797_vm2, %v4461_v15, -inf }
0x1ceb   : > { %4466 = vmax.xlane.f32.xlu0 %v4465_v17  ;;  %v5537_v18 = vpop.f32.mrf.mxu1  ;;  %v4779_v17 = vld [vmem:[%s6759_s10 + $0x10] sm:$0xff] }
0x1cec   : > { %v4778_v18 = vld [vmem:[%s6759_s10 + $0x8] sm:$0xff] }
0x1d01   : > { %4476 = vrot.lane.b32.xlu0 %v6234_v19, %s5951_s8  ;;  %v4640_v19 = vsel %vm623_vm0, %v4636_v7, 0.0 }
0x1d74   : > { %v4467_v61 = vpop.xlane.xlu0 %4466 }
0x1d75   : > { %v4468_v21 = vsub.f32 %v4461_v15, %v4467_v61  ;;  %v4780_v15 = vld [vmem:[%s6759_s10 + $0x18] sm:$0xff]  ;;  %v4777_v61 = vld [vmem:[%s6759_s10] sm:$0xff] }
0x1d77   : > { %v4469_v23 = vmul.f32 1.442695, %v4468_v21  ;;  %v5147_v21 = vld [vmem:[%s6758_s9] ss:$0 sm:$0xff] }
0x1d78   : > { %v4477_v24 = vpop.permute.xlu0 %4476 }
0x1d79   : > { %5735 = vpow2.f32 %v4469_v23  ;;  %5539 = vmatpush3.msra.mxu0 %v4477_v24 }
0x1d7a   : > { %5548 = vmatprep.subr.mxu0 %v4686_v48 }
0x1d86   : > { %v5736_v27 = vpop.eup %5735 }
0x1d87   : > { %v4471_v28 = vsel %vm797_vm2, %v5736_v27, 0.0 }
0x1d88   : > { %4472 = vadd.xlane.f32.xlu1 %v4471_v28  ;;  %v5150_v28 = vld [vmem:[%s6760_s11] ss:$0 sm:$0xff] }
0x1d8c   : > { %4641 = vadd.xlane.f32.xlu1 %v4640_v19 }
0x1da6   : > { %v4382_v29 = vpop.f32.mrf.mxu0 }
0x1da7   : > { %v4386_v30 = vadd.f32 %v4382_v29, %v4145_v59  ;;  %v5146_v59 = vld [vmem:[%s6762_s13] ss:$0 sm:$0xff] }
0x1da8   : > { %v5532_v31 = vpop.f32.mrf.mxu0 }
0x1e11   : > { %v4473_v32 = vpop.xlane.xlu1 %4472 }
0x1e12   : > { %5737 = vrcp.f32 %v4473_v32 }
0x1e15   : > { %v4642_v35 = vpop.xlane.xlu1 %4641 }
0x1e16   : > { %v4647_v37 = vmul.f32 0.03125, %v4642_v35 }
0x1e18   : > { %v4649_v43 = vsub.f32 %v4636_v7, %v4647_v37 }
0x1e1a   : > { %v4651_v11 = vmul.f32 %v4649_v43, %v4649_v43 }
0x1e1c   : > { %v4653_v49 = vsel %vm623_vm0, %v4651_v11, 0.0 }
0x1e1f   : > { %v5738_v60 = vpop.eup %5737 }
0x1e20   : > { %v4475_v26 = vmul.f32 %v5738_v60, %v5736_v27 }
0x1e22   : > { %5541 = vmatmul.mubr.msk.f32.vlgmr.msra.gmra.mxu0 %vm797_vm2, %v4475_v26 }
0x1e23   : > { %5549 = vmatpush3.msra.mxu0 %v4686_v48 }
0x1e24   : > { %5550 = vmatprep.subr.mxu0 %v4685_v0 }
0x1e25   : > { %5551 = vmatpush3.msra.mxu0 %v4685_v0 }
0x1e26   : > { %5552 = vmatprep.subr.mxu0 %v4684_v39 }
0x1e27   : > { %5553 = vmatpush3.msra.mxu0 %v4684_v39 }
0x1e28   : > { %5554 = vmatprep.subr.mxu0 %v4683_v38 }
0x1e29   : > { %5555 = vmatpush3.msra.mxu0 %v4683_v38 }
0x1ee2   : > { %v4548_v33 = vpop.f32.mrf.mxu0 }
0x1ee3   : > { %5546 = vmatmul.mubr.msk.f32.vlgmr.msra.gmra.mxu1 %vm797_vm2, %v4548_v33 }
0x1ee4   : > { %v5542_v34 = vpop.f32.mrf.mxu0  ;;  %5560 = vmatpush3.msra.mxu1 %v4784_v1 }
0x1ee5   : > { %5561 = vmatprep.subr.mxu1 %v4783_v2 }
0x1ee6   : > { %5562 = vmatpush3.msra.mxu1 %v4783_v2 }
0x1ee7   : > { %5563 = vmatprep.subr.mxu1 %v4782_v3 }
0x1ee8   : > { %5564 = vmatpush3.msra.mxu1 %v4782_v3 }
0x1ee9   : > { %5565 = vmatprep.subr.mxu1 %v4781_v4 }
0x1eea   : > { %5566 = vmatpush3.msra.mxu1 %v4781_v4 }
0x1eeb   : > { %5567 = vmatprep.subr.mxu1 %v4780_v15 }
0x1eec   : > { %5568 = vmatpush3.msra.mxu1 %v4780_v15 }
0x1eed   : > { %5569 = vmatprep.subr.mxu1 %v4779_v17 }
0x1eee   : > { %5570 = vmatpush3.msra.mxu1 %v4779_v17 }
0x1eef   : > { %5571 = vmatprep.subr.mxu1 %v4778_v18 }
0x1ef0   : > { %5572 = vmatpush3.msra.mxu1 %v4778_v18 }
0x1ef1   : > { %5573 = vmatprep.subr.mxu1 %v4777_v61 }
0x1ef2   : > { %5574 = vmatpush3.msra.mxu1 %v4777_v61 }
0x1fa3   : > { %v4621_v36 = vpop.f32.mrf.mxu1 }
0x1fa4   : > { %v4625_v52 = vadd.f32 %v4621_v36, %v4386_v30 }
0x1fa5   : > { %v5547_v40 = vpop.f32.mrf.mxu1 }
0x1fa6   : > { %v4626_v42 = vadd.f32 %v4625_v52, %v6580_v41 }
0x1fa8   : > { %v4628_v45 = vadd.f32 %v5748_v44, %v4626_v42 }
0x1faa   : > { %v4637_v46 = vadd.f32 %v5144_v12, %v4628_v45 }
0x1fac   : > { %v4643_v47 = vsel %vm623_vm0, %v4637_v46, 0.0 }
0x1fad   : > { %4644 = vadd.xlane.f32.xlu1 %v4643_v47 }
0x1fb1   : > { %4654 = vadd.xlane.f32.xlu1 %v4653_v49 }
0x2036   : > { %v4645_v50 = vpop.xlane.xlu1 %4644 }
0x2037   : > { %v4648_v51 = vmul.f32 0.03125, %v4645_v50 }
0x2039   : > { %v4650_v53 = vsub.f32 %v4637_v46, %v4648_v51 }
0x203a   : > { %v4655_v22 = vpop.xlane.xlu1 %4654 }
0x203b   : > { %v4659_v54 = vmul.f32 0.03125, %v4655_v22  ;;  %v4652_v55 = vmul.f32 %v4650_v53, %v4650_v53 }
0x203d   : > { %v4661_v6 = vadd.f32 1e-05, %v4659_v54  ;;  %v4656_v41 = vsel %vm623_vm0, %v4652_v55, 0.0  ;;  %v5154_v54 = vld [vmem:[%s6813_s18] ss:$0 sm:$0xff] }
0x203e   : > { %4657 = vadd.xlane.f32.xlu1 %v4656_v41 }
0x203f   : > { %5739 = vrsqrt.f32 %v4661_v6 }
0x204c   : > { %v5740_v56 = vpop.eup %5739 }
0x204d   : > { %v4665_v58 = vmul.f32 %v5740_v56, %v4649_v43 }
0x204f   : > { %v4673_v62 = vmul.f32 %v5145_v57, %v4665_v58 }
0x2051   : > { %v6649_v63 = vadd.f32 %v5146_v59, %v4673_v62 }
0x2053   : > { %5556 = vmatprep.mubr.msk.f32.mxu0 %vm623_vm0, %v6649_v63 }
0x20c7   : > { %v4658_v5 = vpop.xlane.xlu1 %4657 }
0x20c8   : > { %v4660_v16 = vmul.f32 0.03125, %v4658_v5 }
0x20ca   : > { %v4662_v8 = vadd.f32 1e-05, %v4660_v16 }
0x20cc   : > { %5741 = vrsqrt.f32 %v4662_v8 }
0x20d9   : > { %v5742_v9 = vpop.eup %5741 }
0x20da   : > { %v4666_v10 = vmul.f32 %v5742_v9, %v4650_v53  ;;  %v5153_v53 = vld [vmem:[%s6763_s14] ss:$0 sm:$0xff] }
0x20dc   : > { %v4674_v13 = vmul.f32 %v5145_v57, %v4666_v10 }
0x20de   : > { %v4682_v14 = vadd.f32 %v5146_v59, %v4674_v13 }
0x20e0   : > { %5557 = vmatmul.mubr.msk.f32.vlgmr.msra.gmra.mxu0 %vm623_vm0, %v4682_v14 }
0x21a0   : > { %v5558_v23 = vpop.f32.mrf.mxu0 }
0x21a1   : > { %v4772_v24 = vadd.f32 %v5558_v23, %v5147_v21 }
0x21a2   : > { %v4766_v25 = vpop.f32.mrf.mxu0 }
0x21a3   : > { %v4767_v20 = vadd.f32 %v5147_v21, %v4766_v25  ;;  %v4776_v27 = vmax.f32 %v4772_v24, 0.0 }
0x21a5   : > { %v4775_v12 = vmax.f32 %v4767_v20, 0.0 }
0x21a7   : > { %5575 = vmatprep.mubr.msk.f32.mxu1 %vm4792_vm3, %v4775_v12 }
0x21a8   : > { %5576 = vmatmul.mubr.msk.f32.vlgmr.msra.gmra.mxu1 %vm4792_vm3, %v4776_v27 }
0x2268   : > { %v5577_v7 = vpop.f32.mrf.mxu1 }
0x2269   : > { %v4871_v19 = vadd.f32 %v5577_v7, %v5150_v28 }
0x226a   : > { %v4865_v29 = vpop.f32.mrf.mxu1 }
0x226b   : > { %v4866_v30 = vadd.f32 %v5150_v28, %v4865_v29  ;;  %v4875_v31 = vadd.f32 %v4871_v19, %v4682_v14 }
0x226d   : > { %v4881_v32 = vsel %vm623_vm0, %v4875_v31, 0.0  ;;  %v4874_v60 = vadd.f32 %v4866_v30, %v6649_v63 }
0x226e   : > { %4882 = vadd.xlane.f32.xlu1 %v4881_v32 }
0x226f   : > { %v4878_v26 = vsel %vm623_vm0, %v4874_v60, 0.0 }
0x2270   : > { %4879 = vadd.xlane.f32.xlu0 %v4878_v26 }
0x22f7   : > { %v4883_v33 = vpop.xlane.xlu1 %4882 }
0x22f8   : > { %v4885_v34 = vmul.f32 0.03125, %v4883_v33 }
0x22f9   : > { %v4880_v35 = vpop.xlane.xlu0 %4879 }
0x22fa   : > { %v4884_v36 = vmul.f32 0.03125, %v4880_v35  ;;  %v4887_v37 = vsub.f32 %v4875_v31, %v4885_v34 }
0x22fc   : > { %v4886_v52 = vsub.f32 %v4874_v60, %v4884_v36  ;;  %v4889_v43 = vmul.f32 %v4887_v37, %v4887_v37 }
0x22fe   : > { %v4888_v40 = vmul.f32 %v4886_v52, %v4886_v52  ;;  %v4893_v44 = vsel %vm623_vm0, %v4889_v43, 0.0 }
0x2300   : > { %v4890_v42 = vsel %vm623_vm0, %v4888_v40, 0.0 }
0x2301   : > { %4891 = vadd.xlane.f32.xlu1 %v4890_v42 }
0x2305   : > { %4894 = vadd.xlane.f32.xlu1 %v4893_v44 }
0x238a   : > { %v4892_v45 = vpop.xlane.xlu1 %4891 }
0x238b   : > { %v4896_v46 = vmul.f32 0.03125, %v4892_v45 }
0x238d   : > { %v4898_v47 = vadd.f32 1e-05, %v4896_v46 }
0x238e   : > { %v4895_v11 = vpop.xlane.xlu1 %4894 }
0x238f   : > { %5743 = vrsqrt.f32 %v4898_v47  ;;  %v4897_v49 = vmul.f32 0.03125, %v4895_v11 }
0x2391   : > { %v4899_v50 = vadd.f32 1e-05, %v4897_v49 }
0x2393   : > { %5745 = vrsqrt.f32 %v4899_v50 }
0x239c   : > { %v5744_v51 = vpop.eup %5743 }
0x239d   : > { %v4902_v22 = vmul.f32 %v5744_v51, %v4886_v52 }
0x239f   : > { %v4910_v55 = vmul.f32 %v5153_v53, %v4902_v22 }
0x23a0   : > { %v5746_v6 = vpop.eup %5745 }
0x23a1   : > { %v4918_v41 = vadd.f32 %v5154_v54, %v4910_v55  ;;  %v4903_v56 = vmul.f32 %v5746_v6, %v4887_v37 }
0x23a3   : > { %v4911_v57 = vmul.f32 %v5153_v53, %v4903_v56  ;;  %4920 = vst.msk [vmem:[%s599_s26] sm:$0xff] %vm623_vm0, %v4918_v41 }
0x23a5   : > { %v4919_v58 = vadd.f32 %v5154_v54, %v4911_v57 }
0x23a7   : > { %4921 = vst.msk [vmem:[%s599_s26 + $0x8] sm:$0xff] %vm623_vm0, %v4919_v58 }
0x23a8   : > { %5868 = shalt.err (!%p5865_p6)
}
0x23a9   : > { %s5869_s18 = scalar_lea.hbm %s6702_s17, 256  ;;  %s5873_s26 = scalar_lea.hbm %s6815_s4, 512 }
0x23aa   : > { %p5870_p4 = scmp.ne.s32.totalorder %s6702_s17, %s5869_s18  ;;  %p5874_p11 = scmp.lt.s32.totalorder %s6702_s17, %s6815_s4 }
0x23ab   : > { %p5875_p5 = scmp.lt.s32.totalorder %s5873_s26, %s5869_s18 }
0x23ac   : > { %p5871_p8 = pnand %p5870_p4, %p6816_p12 }
0x23ad   : > { %p5876_p7 = por %p5875_p5, %p5874_p11 }
0x23ae   : > { %p5872_p3 = pneg %p5871_p8 }
0x23b0   : > { %p5877_p1 = pnand %p5876_p7, %p5872_p3 }
0x23b2   : > { %5880 = shalt.err (!%p5877_p1)
}
0x23b3   : > { %s5953_s21 = smov 128  }
0x23b4   : > { %5592 = dma.vmem_to_hbm [thread:$0]  (%p6816_p12), %s6704_s19, 256, %s6702_s17, %s4923_s25, %s5953_s21, %s5953_s21, %s5951_s8  }
0x23b5 PF: > { %s6817_s27 = sld [smem:[#allocation15_spill]]  ;;  %p6820_p13 = scmp.ge.s32.totalorder %s5927_s24, 2 }
0x23b6   : > { %s6818_s16 = sld [smem:[#allocation17_spill]] }
0x23bb   : > { %s4951_s29 = sand.u32 1, %s6817_s27  }
0x23bc   : > { %p6819_p9 = scmp.ne.s32.totalorder %s6818_s16, 0  ;;  %s4952_s18 = scalar_lea.sflag [#allocation4], %s4951_s29 }
0x23be   : > { %p5609_p0 = pnand %p6820_p13, %p6819_p9 }
0x23c0   : > { %p5610_p2 = pneg %p5609_p0 }
0x23c2   : > { %5910 = dma.done.wait (%p5610_p2), %s4952_s18, 256  }
0x23c3   : > { %5912 = vsyncadd (%p5610_p2), %s4952_s18, 4294967040  ;;  %s6821_s28 = sld [smem:[#allocation16_spill]]  ;;  %p31_p10 = scmp.ge.s32.totalorder %s6128_s0, 4  }
0x23c4   : > { %s6822_s23 = sld [smem:[#allocation18_spill]]  ;;  %s6823_s21 = smov %s5919_s22 }
0x23c5   : > { %s6825_s24 = smov %s6128_s0  ;;  %33 = sbr.rel (!%p31_p10) target bundleno = 14 (0xe), region = 151 }
0x23c9   : > { %s6824_s22 = smov %s6821_s28 }
0x23ca   :  { %4957 = vsyncpa [#allocation3], 1 }
0x23cb   :  { %4959 = vsyncpa [#allocation3 + $0x1], 1 }
0x23cc   :  { %4960 = vsyncpa [#allocation6], 1 }
0x23cd   :  { %4961 = vsyncpa [#allocation9], 1 }
0x23ce   :  { %4962 = vsyncpa [#allocation4], 1 }
0x23cf   :  { %4964 = vsyncpa [#allocation4 + $0x1], 1 }

</bundles_post_ra>
